<compile_context>
chip_gen: v7x
topology: tpu7x:2x2x1
jax: 0.10.0
libtpu: 0.0.40
codegen_flags: <defaults>
</compile_context>

<pallas_src>
import jax
import jax.numpy as jnp
from jax.experimental import pallas as pl
from jax.experimental.pallas import tpu as pltpu


def _attention_pooling_kernel(qh_ref, q_ref, ub_ref, mask_ref,
                              w1_ref, w2_ref, b2_ref, w3_ref,
                              a1_ref, a2_ref, b3_ref,
                              out_ref):
    """One (core, S-tile) grid step, sequence-on-lanes layout."""
    eps = 1e-9
    B, E, tS = ub_ref.shape

    def dice(x, alpha):
        # Dice stats over the batch axis (leading dim), per (feature, s) element,
        # unbiased variance (torch.var default) -> independent across S tiles.
        mean = jnp.mean(x, axis=0, keepdims=True)
        xc = x - mean                                          # reuse centered tensor
        var = jnp.sum(xc * xc, axis=0, keepdims=True) * (1.0 / (B - 1))
        norm = xc * jax.lax.rsqrt(var + eps)                   # rsqrt -> EUP slot
        p = 0.5 * (jnp.tanh(0.5 * norm) + 1.0)                 # sigmoid via one tanh push
        return x * (alpha + (1.0 - alpha) * p)                 # == alpha*x*(1-p) + x*p

    ub = ub_ref[...]                                           # (B, E, tS)  streamed tile
    q = q_ref[...]                                             # (B, E, 1)   resident

    # ---- FC1: concat folded into the weights, both dots fused into one K=2E matmul.
    #      The query-only term qh (grid-invariant) arrives precomputed.
    x = jnp.concatenate([ub, ub * q], axis=1)                  # (B, 2E, tS)
    h1 = jnp.einsum('bfk,bkt->bft', w1_ref[...], x,
                    preferred_element_type=jnp.float32)        # (B, FC1, tS) f32
    h1 = h1 + qh_ref[...]                                      # qh = q@(W1q+W1d)+b1
    h1 = dice(h1, a1_ref[0])
    # TODO(synk): nn.Dropout(p=0.2) is identity in eval mode; training-mode dropout
    # is not implemented.

    # ---- FC2 ----
    h2 = jnp.einsum('bfk,bkt->bft', w2_ref[...], h1,
                    preferred_element_type=jnp.float32)        # (B, FC2, tS) f32
    h2 = h2 + b2_ref[...][None]                                # b2 is (FC2, 1)
    h2 = dice(h2, a2_ref[0])

    # ---- FC3 (out_features = 1): small sublane reduction over FC2; attention
    #      scores stay lane-dense as (B, tS).
    attn = jnp.sum(h2 * w3_ref[...][None], axis=1) + b3_ref[0]     # (B, tS)

    # ---- masked weighted sum over this S tile into the resident accumulator ----
    w = attn * mask_ref[...]                                       # (B, tS) f32
    partial = jnp.sum(ub.astype(jnp.float32) * w[:, None, :], axis=2)   # (B, E)

    @pl.when(pl.program_id(1) == 0)
    def _():
        out_ref[...] = jnp.zeros_like(out_ref)

    out_ref[...] += partial[None]


def _pick_block_s(S, B, E, FC1, FC2, *, vmem_budget_bytes, max_block_s=2048):
    """VMEM-budgeted sequence tile (portable: v7x has half the VMEM of v5e/v6e)."""
    per_pos = B * (2 * E * 2          # ub tile, 2 pipeline buffers, bf16
                   + 2 * 4            # mask tile, 2 buffers, f32
                   + 2 * E * 2        # x = [ub ; q*ub] concat, bf16
                   + 4 * FC1 * 4      # h1 + Dice temporaries, f32
                   + 4 * FC2 * 4      # h2 + Dice temporaries, f32
                   + 4 * 4)           # attn / weighted-sum rows, f32
    cand = int((vmem_budget_bytes // max(per_pos, 1)) // 128 * 128)
    cand = min(max(cand, 128), max_block_s)
    if cand >= S or S % 128 != 0:
        return S
    while cand > 128 and S % cand != 0:
        cand -= 128
    return cand


def attention_pooling(query, user_behavior, mask, params, *,
                      block_s=None, num_cores=1,
                      compute_dtype=jnp.bfloat16,
                      vmem_limit_bytes=32 * 1024 * 1024):
    """query: (B, E) or (B, 1, E); user_behavior: (B, S, E); mask: (B, S) or (B, S, 1).

    `params` holds the original (un-folded) parameters:
      w1 (4E, FC1), b1 (FC1,), alpha1 (1,), w2 (FC1, FC2), b2 (FC2,), alpha2 (1,),
      w3 (FC2, 1), b3 (1,).
    """
    user_behavior = jnp.asarray(user_behavior)
    B, S, E = user_behavior.shape
    assert B > 1, "Dice uses unbiased batch variance (ddof=1); B must be > 1"
    query = jnp.asarray(query, jnp.float32).reshape(B, E)
    mask = jnp.asarray(mask, jnp.float32).reshape(B, S)

    w1 = jnp.asarray(params['w1'], jnp.float32)               # (4E, FC1)
    FC1 = w1.shape[1]
    w1q, w1u, w1d, w1p = w1[:E], w1[E:2 * E], w1[2 * E:3 * E], w1[3 * E:]
    b1 = jnp.asarray(params['b1'], jnp.float32).reshape(1, FC1)
    w2 = jnp.asarray(params['w2'], jnp.float32)                # (FC1, FC2)
    FC2 = w2.shape[1]
    b2 = jnp.asarray(params['b2'], jnp.float32).reshape(FC2, 1)
    w3 = jnp.asarray(params['w3'], jnp.float32).reshape(FC2, 1)
    a1 = jnp.asarray(params['alpha1'], jnp.float32).reshape(1)
    a2 = jnp.asarray(params['alpha2'], jnp.float32).reshape(1)
    b3 = jnp.asarray(params['b3'], jnp.float32).reshape(1)

    # Fold the [q, ub, q-ub, q*ub] concat into the first Linear:
    #   attn_in @ W1 = q@(W1q+W1d) + ub@(W1u-W1d) + (q*ub)@W1p
    # The query-only term is grid-invariant -> computed once here, resident in VMEM.
    qh = (query @ (w1q + w1d) + b1).reshape(B, FC1, 1)          # (B, FC1, 1) f32

    # Fused + transposed (sequence-on-lanes) weights; tiny, so pre-broadcast over B
    # to keep the batched MXU dots free of per-grid-step broadcast_in_dim.
    w1t = jnp.concatenate([w1u - w1d, w1p], axis=0).T           # (FC1, 2E)
    w1b = jnp.broadcast_to(w1t[None], (B, FC1, 2 * E)).astype(compute_dtype)
    w2b = jnp.broadcast_to(w2.T[None], (B, FC2, FC1))           # (B, FC2, FC1) f32

    # Sequence-on-lanes data layout + low-precision streaming of the one large array.
    # (Wrapper-side layout plumbing; a real producer would emit this layout directly.)
    ub_t = jnp.swapaxes(user_behavior, 1, 2).astype(compute_dtype)   # (B, E, S)
    q_t = query.astype(compute_dtype).reshape(B, E, 1)

    if block_s is None:
        block_s = _pick_block_s(S, B, E, FC1, FC2,
                                vmem_budget_bytes=int(vmem_limit_bytes * 0.75))
    if block_s != S:
        assert S % block_s == 0 and block_s % 128 == 0, (
            "block_s must divide S and be a multiple of 128 (or equal S)")
    num_tiles = S // block_s
    assert num_tiles % num_cores == 0, "num_cores must divide the number of S tiles"
    tiles_per_core = num_tiles // num_cores

    res3 = lambda c, s: (0, 0, 0)
    smem = pl.BlockSpec(memory_space=pltpu.MemorySpace.SMEM)

    out = pl.pallas_call(
        _attention_pooling_kernel,
        out_shape=jax.ShapeDtypeStruct((num_cores, B, E), jnp.float32),
        grid=(num_cores, tiles_per_core),
        in_specs=[
            pl.BlockSpec((B, FC1, 1), res3),                              # qh (resident)
            pl.BlockSpec((B, E, 1), res3),                                # query (resident)
            pl.BlockSpec((B, E, block_s),
                         lambda c, s: (0, 0, c * tiles_per_core + s)),    # behavior tile
            pl.BlockSpec((B, block_s),
                         lambda c, s: (0, c * tiles_per_core + s)),       # mask tile
            pl.BlockSpec((B, FC1, 2 * E), res3),                          # fused W1 (resident)
            pl.BlockSpec((B, FC2, FC1), res3),                            # W2^T (resident)
            pl.BlockSpec((FC2, 1), lambda c, s: (0, 0)),                  # b2
            pl.BlockSpec((FC2, 1), lambda c, s: (0, 0)),                  # w3
            smem, smem, smem,                                             # alpha1, alpha2, b3
        ],
        out_specs=pl.BlockSpec((1, B, E), lambda c, s: (c, 0, 0)),        # per-core accumulator
        compiler_params=pltpu.CompilerParams(
            dimension_semantics=("parallel", "arbitrary"),
            vmem_limit_bytes=vmem_limit_bytes,
        ),
    )(qh, q_t, ub_t, mask, w1b, w2b, b2, w3, a1, a2, b3)

    return jnp.sum(out, axis=0)                                           # (B, E)


def reference(query, user_behavior, mask, params):
    """Pure-JAX float32 mirror of the PyTorch module (concat form, un-folded weights)."""
    eps = 1e-9
    user_behavior = jnp.asarray(user_behavior, jnp.float32)
    B, S, E = user_behavior.shape
    query = jnp.asarray(query, jnp.float32).reshape(B, E)
    mask3 = jnp.asarray(mask, jnp.float32).reshape(B, S, 1)
    qb = jnp.broadcast_to(query[:, None, :], (B, S, E))
    x = jnp.concatenate([qb, user_behavior, qb - user_behavior, qb * user_behavior], axis=-1)

    def dice(x, alpha):
        mean = jnp.mean(x, axis=0, keepdims=True)
        var = jnp.var(x, axis=0, ddof=1, keepdims=True)
        norm = (x - mean) / jnp.sqrt(var + eps)
        p = jax.nn.sigmoid(norm)
        return alpha * x * (1.0 - p) + x * p

    h = jnp.einsum('bsd,df->bsf', x, params['w1']) + params['b1']
    h = dice(h, params['alpha1'][0])
    h = jnp.einsum('bsd,df->bsf', h, params['w2']) + params['b2']
    h = dice(h, params['alpha2'][0])
    attn = jnp.einsum('bsd,do->bso', h, params['w3']) + params['b3'][0]
    return jnp.sum(user_behavior * (attn * mask3), axis=1)


if __name__ == "__main__":
    # Small DIN-consistent shapes; S=256 with block_s=128 exercises the
    # sequence-tiled grid and the resident output accumulator.
    B, S, E = 8, 256, 32
    FC1, FC2 = 32, 16
    D_IN = 4 * E

    key = jax.random.PRNGKey(0)
    ks = jax.random.split(key, 8)

    query = jax.random.normal(ks[0], (B, 1, E), dtype=jnp.float32)       # (B, 1, E) as in DIN
    user_behavior = jax.random.normal(ks[1], (B, S, E), dtype=jnp.float32)
    mask = (jax.random.uniform(ks[2], (B, S)) > 0.3).astype(jnp.float32)

    params = {
        'w1': 0.1 * jax.random.normal(ks[3], (D_IN, FC1), dtype=jnp.float32),
        'b1': 0.01 * jax.random.normal(ks[4], (FC1,), dtype=jnp.float32),
        'alpha1': jnp.full((1,), 0.25, dtype=jnp.float32),   # nonzero to exercise Dice alpha path
        'w2': 0.1 * jax.random.normal(ks[5], (FC1, FC2), dtype=jnp.float32),
        'b2': 0.01 * jax.random.normal(ks[6], (FC2,), dtype=jnp.float32),
        'alpha2': jnp.full((1,), -0.1, dtype=jnp.float32),
        'w3': 0.1 * jax.random.normal(ks[7], (FC2, 1), dtype=jnp.float32),
        'b3': jnp.zeros((1,), dtype=jnp.float32),
    }

    ref = jax.block_until_ready(reference(query, user_behavior, mask, params))

    # (1) float32 path, two S tiles on one grid axis -> validates the math tightly.
    out_f32 = attention_pooling(query, user_behavior, mask, params,
                                block_s=128, num_cores=1,
                                compute_dtype=jnp.float32)
    out_f32 = jax.block_until_ready(out_f32)
    assert out_f32.shape == (B, E)
    err_f32 = float(jnp.max(jnp.abs(out_f32 - ref)))
    assert jnp.allclose(out_f32, ref, rtol=2e-3, atol=2e-3), (
        f"f32 kernel mismatch vs reference, max abs err={err_f32}")

    # (2) bf16-streaming path with the S tiles split over a leading 'parallel' axis
    #     (2-way TensorCore split on v7x; on single-TC parts it simply runs sequentially).
    out_bf16 = attention_pooling(query, user_behavior, mask, params,
                                 block_s=128, num_cores=2,
                                 compute_dtype=jnp.bfloat16)
    out_bf16 = jax.block_until_ready(out_bf16)
    assert out_bf16.shape == (B, E)
    scale = float(jnp.max(jnp.abs(ref)))
    err_bf16 = float(jnp.max(jnp.abs(out_bf16 - ref)))
    assert err_bf16 <= 5e-2 * max(scale, 1.0), (
        f"bf16 kernel mismatch vs reference, max abs err={err_bf16}, ref scale={scale}")

    print("KERNEL_OK")
</pallas_src>

<mosaic_0001>
module attributes {stable_mosaic.version = 11 : i64} {
  func.func @_attention_pooling_kernel(%arg0: i32, %arg1: i32, %arg2: memref<8x32x1xf32, #tpu.memory_space<vmem>>, %arg3: memref<8x32x1xf32, #tpu.memory_space<vmem>>, %arg4: memref<8x32x128xf32, #tpu.memory_space<vmem>>, %arg5: memref<8x128xf32, #tpu.memory_space<vmem>>, %arg6: memref<8x32x64xf32, #tpu.memory_space<vmem>>, %arg7: memref<8x16x32xf32, #tpu.memory_space<vmem>>, %arg8: memref<16x1xf32, #tpu.memory_space<vmem>>, %arg9: memref<16x1xf32, #tpu.memory_space<vmem>>, %arg10: memref<1xf32, #tpu.memory_space<smem>>, %arg11: memref<1xf32, #tpu.memory_space<smem>>, %arg12: memref<1xf32, #tpu.memory_space<smem>>, %arg13: memref<1x8x32xf32, #tpu.memory_space<vmem>>) attributes {dimension_semantics = [#tpu.dimension_semantics<parallel>, #tpu.dimension_semantics<arbitrary>], iteration_bounds = array<i64: 1, 2>, scalar_prefetch = 0 : i64, scratch_operands = 0 : i64, tpu.core_type = #tpu.core_type<tc>, window_params = [{pipeline_mode = #tpu.pipeline_mode<synchronous>, transform_indices = @transform_0, window_bounds = array<i64: 8, 32, 1>}, {pipeline_mode = #tpu.pipeline_mode<synchronous>, transform_indices = @transform_1, window_bounds = array<i64: 8, 32, 1>}, {transform_indices = @transform_2, window_bounds = array<i64: 8, 32, 128>}, {transform_indices = @transform_3, window_bounds = array<i64: 8, 128>}, {pipeline_mode = #tpu.pipeline_mode<synchronous>, transform_indices = @transform_4, window_bounds = array<i64: 8, 32, 64>}, {pipeline_mode = #tpu.pipeline_mode<synchronous>, transform_indices = @transform_5, window_bounds = array<i64: 8, 16, 32>}, {pipeline_mode = #tpu.pipeline_mode<synchronous>, transform_indices = @transform_6, window_bounds = array<i64: 16, 1>}, {pipeline_mode = #tpu.pipeline_mode<synchronous>, transform_indices = @transform_7, window_bounds = array<i64: 16, 1>}, {transform_indices = @transform_8, window_bounds = array<i64: 1>}, {transform_indices = @transform_9, window_bounds = array<i64: 1>}, {transform_indices = @transform_10, window_bounds = array<i64: 1>}, {transform_indices = @transform_11, window_bounds = array<i64: 1, 8, 32>}]} {
    %c0 = arith.constant 0 : index
    %c0_0 = arith.constant 0 : index
    %c0_1 = arith.constant 0 : index
    %0 = vector.load %arg4[%c0, %c0_0, %c0_1] : memref<8x32x128xf32, #tpu.memory_space<vmem>>, vector<8x32x128xf32>
    %c0_2 = arith.constant 0 : index
    %c0_3 = arith.constant 0 : index
    %c0_4 = arith.constant 0 : index
    %1 = vector.load %arg3[%c0_2, %c0_3, %c0_4] : memref<8x32x1xf32, #tpu.memory_space<vmem>>, vector<8x32x1xf32>
    %2 = vector.broadcast %1 : vector<8x32x1xf32> to vector<8x32x128xf32>
    %3 = arith.mulf %0, %2 : vector<8x32x128xf32>
    %4 = tpu.concatenate %0, %3 in 1 : vector<8x32x128xf32>, vector<8x32x128xf32> -> vector<8x64x128xf32>
    %c0_5 = arith.constant 0 : index
    %c0_6 = arith.constant 0 : index
    %c0_7 = arith.constant 0 : index
    %5 = vector.load %arg6[%c0_5, %c0_6, %c0_7] : memref<8x32x64xf32, #tpu.memory_space<vmem>>, vector<8x32x64xf32>
    "tpu.trace_start"() <{level = 10 : i32, message = "bfk,bkt->bft"}> : () -> ()
    %cst = arith.constant dense<0.000000e+00> : vector<8x32x128xf32>
    %6 = tpu.matmul %5, %4, %cst {dimension_numbers = #tpu.dot_dimension_numbers<[2], [1], [1], [2], [0, 0, 0, 1, 1, 2], [0], [0]>} : vector<8x32x64xf32>, vector<8x64x128xf32>, vector<8x32x128xf32> -> vector<8x32x128xf32>
    "tpu.trace_stop"() : () -> ()
    %c0_8 = arith.constant 0 : index
    %c0_9 = arith.constant 0 : index
    %c0_10 = arith.constant 0 : index
    %7 = vector.load %arg2[%c0_8, %c0_9, %c0_10] : memref<8x32x1xf32, #tpu.memory_space<vmem>>, vector<8x32x1xf32>
    %8 = vector.broadcast %7 : vector<8x32x1xf32> to vector<8x32x128xf32>
    %9 = arith.addf %6, %8 : vector<8x32x128xf32>
    %c0_11 = arith.constant 0 : index
    %10 = memref.load %arg10[%c0_11] : memref<1xf32, #tpu.memory_space<smem>>
    %cst_12 = arith.constant dense<0.000000e+00> : vector<32x128xf32>
    %11 = vector.multi_reduction <add>, %9, %cst_12 [0] : vector<8x32x128xf32> to vector<32x128xf32>
    %12 = vector.shape_cast %11 : vector<32x128xf32> to vector<1x32x128xf32>
    %cst_13 = arith.constant 8.000000e+00 : f32
    %13 = vector.broadcast %cst_13 : f32 to vector<1x32x128xf32>
    %14 = arith.divf %12, %13 : vector<1x32x128xf32>
    %15 = vector.broadcast %14 : vector<1x32x128xf32> to vector<8x32x128xf32>
    %16 = arith.subf %9, %15 : vector<8x32x128xf32>
    %17 = arith.mulf %16, %16 : vector<8x32x128xf32>
    %cst_14 = arith.constant dense<0.000000e+00> : vector<32x128xf32>
    %18 = vector.multi_reduction <add>, %17, %cst_14 [0] : vector<8x32x128xf32> to vector<32x128xf32>
    %19 = vector.shape_cast %18 : vector<32x128xf32> to vector<1x32x128xf32>
    %cst_15 = arith.constant 0.142857149 : f32
    %20 = vector.broadcast %cst_15 : f32 to vector<1x32x128xf32>
    %21 = arith.mulf %19, %20 : vector<1x32x128xf32>
    %cst_16 = arith.constant 9.99999971E-10 : f32
    %22 = vector.broadcast %cst_16 : f32 to vector<1x32x128xf32>
    %23 = arith.addf %21, %22 : vector<1x32x128xf32>
    %24 = math.rsqrt %23 : vector<1x32x128xf32>
    %25 = vector.broadcast %24 : vector<1x32x128xf32> to vector<8x32x128xf32>
    %26 = arith.mulf %16, %25 : vector<8x32x128xf32>
    %cst_17 = arith.constant 5.000000e-01 : f32
    %27 = vector.broadcast %cst_17 : f32 to vector<8x32x128xf32>
    %28 = arith.mulf %27, %26 : vector<8x32x128xf32>
    %29 = math.tanh %28 : vector<8x32x128xf32>
    %cst_18 = arith.constant 1.000000e+00 : f32
    %30 = vector.broadcast %cst_18 : f32 to vector<8x32x128xf32>
    %31 = arith.addf %29, %30 : vector<8x32x128xf32>
    %cst_19 = arith.constant 5.000000e-01 : f32
    %32 = vector.broadcast %cst_19 : f32 to vector<8x32x128xf32>
    %33 = arith.mulf %32, %31 : vector<8x32x128xf32>
    %cst_20 = arith.constant 1.000000e+00 : f32
    %34 = arith.subf %cst_20, %10 : f32
    %35 = vector.broadcast %34 : f32 to vector<8x32x128xf32>
    %36 = arith.mulf %35, %33 : vector<8x32x128xf32>
    %37 = vector.broadcast %10 : f32 to vector<8x32x128xf32>
    %38 = arith.addf %37, %36 : vector<8x32x128xf32>
    %39 = arith.mulf %9, %38 : vector<8x32x128xf32>
    %c0_21 = arith.constant 0 : index
    %c0_22 = arith.constant 0 : index
    %c0_23 = arith.constant 0 : index
    %40 = vector.load %arg7[%c0_21, %c0_22, %c0_23] : memref<8x16x32xf32, #tpu.memory_space<vmem>>, vector<8x16x32xf32>
    "tpu.trace_start"() <{level = 10 : i32, message = "bfk,bkt->bft"}> : () -> ()
    %cst_24 = arith.constant dense<0.000000e+00> : vector<8x16x128xf32>
    %41 = tpu.matmul %40, %39, %cst_24 {dimension_numbers = #tpu.dot_dimension_numbers<[2], [1], [1], [2], [0, 0, 0, 1, 1, 2], [0], [0]>} : vector<8x16x32xf32>, vector<8x32x128xf32>, vector<8x16x128xf32> -> vector<8x16x128xf32>
    "tpu.trace_stop"() : () -> ()
    %c0_25 = arith.constant 0 : index
    %c0_26 = arith.constant 0 : index
    %42 = vector.load %arg8[%c0_25, %c0_26] : memref<16x1xf32, #tpu.memory_space<vmem>>, vector<16x1xf32>
    %43 = vector.shape_cast %42 : vector<16x1xf32> to vector<1x16x1xf32>
    %44 = vector.broadcast %43 : vector<1x16x1xf32> to vector<8x16x128xf32>
    %45 = arith.addf %41, %44 : vector<8x16x128xf32>
    %c0_27 = arith.constant 0 : index
    %46 = memref.load %arg11[%c0_27] : memref<1xf32, #tpu.memory_space<smem>>
    %cst_28 = arith.constant dense<0.000000e+00> : vector<16x128xf32>
    %47 = vector.multi_reduction <add>, %45, %cst_28 [0] : vector<8x16x128xf32> to vector<16x128xf32>
    %48 = vector.shape_cast %47 : vector<16x128xf32> to vector<1x16x128xf32>
    %cst_29 = arith.constant 8.000000e+00 : f32
    %49 = vector.broadcast %cst_29 : f32 to vector<1x16x128xf32>
    %50 = arith.divf %48, %49 : vector<1x16x128xf32>
    %51 = vector.broadcast %50 : vector<1x16x128xf32> to vector<8x16x128xf32>
    %52 = arith.subf %45, %51 : vector<8x16x128xf32>
    %53 = arith.mulf %52, %52 : vector<8x16x128xf32>
    %cst_30 = arith.constant dense<0.000000e+00> : vector<16x128xf32>
    %54 = vector.multi_reduction <add>, %53, %cst_30 [0] : vector<8x16x128xf32> to vector<16x128xf32>
    %55 = vector.shape_cast %54 : vector<16x128xf32> to vector<1x16x128xf32>
    %cst_31 = arith.constant 0.142857149 : f32
    %56 = vector.broadcast %cst_31 : f32 to vector<1x16x128xf32>
    %57 = arith.mulf %55, %56 : vector<1x16x128xf32>
    %cst_32 = arith.constant 9.99999971E-10 : f32
    %58 = vector.broadcast %cst_32 : f32 to vector<1x16x128xf32>
    %59 = arith.addf %57, %58 : vector<1x16x128xf32>
    %60 = math.rsqrt %59 : vector<1x16x128xf32>
    %61 = vector.broadcast %60 : vector<1x16x128xf32> to vector<8x16x128xf32>
    %62 = arith.mulf %52, %61 : vector<8x16x128xf32>
    %cst_33 = arith.constant 5.000000e-01 : f32
    %63 = vector.broadcast %cst_33 : f32 to vector<8x16x128xf32>
    %64 = arith.mulf %63, %62 : vector<8x16x128xf32>
    %65 = math.tanh %64 : vector<8x16x128xf32>
    %cst_34 = arith.constant 1.000000e+00 : f32
    %66 = vector.broadcast %cst_34 : f32 to vector<8x16x128xf32>
    %67 = arith.addf %65, %66 : vector<8x16x128xf32>
    %cst_35 = arith.constant 5.000000e-01 : f32
    %68 = vector.broadcast %cst_35 : f32 to vector<8x16x128xf32>
    %69 = arith.mulf %68, %67 : vector<8x16x128xf32>
    %cst_36 = arith.constant 1.000000e+00 : f32
    %70 = arith.subf %cst_36, %46 : f32
    %71 = vector.broadcast %70 : f32 to vector<8x16x128xf32>
    %72 = arith.mulf %71, %69 : vector<8x16x128xf32>
    %73 = vector.broadcast %46 : f32 to vector<8x16x128xf32>
    %74 = arith.addf %73, %72 : vector<8x16x128xf32>
    %75 = arith.mulf %45, %74 : vector<8x16x128xf32>
    %c0_37 = arith.constant 0 : index
    %c0_38 = arith.constant 0 : index
    %76 = vector.load %arg9[%c0_37, %c0_38] : memref<16x1xf32, #tpu.memory_space<vmem>>, vector<16x1xf32>
    %77 = vector.shape_cast %76 : vector<16x1xf32> to vector<1x16x1xf32>
    %78 = vector.broadcast %77 : vector<1x16x1xf32> to vector<8x16x128xf32>
    %79 = arith.mulf %75, %78 : vector<8x16x128xf32>
    %cst_39 = arith.constant dense<0.000000e+00> : vector<8x128xf32>
    %80 = vector.multi_reduction <add>, %79, %cst_39 [1] : vector<8x16x128xf32> to vector<8x128xf32>
    %c0_40 = arith.constant 0 : index
    %81 = memref.load %arg12[%c0_40] : memref<1xf32, #tpu.memory_space<smem>>
    %82 = vector.broadcast %81 : f32 to vector<8x128xf32>
    %83 = arith.addf %80, %82 : vector<8x128xf32>
    %c0_41 = arith.constant 0 : index
    %c0_42 = arith.constant 0 : index
    %84 = vector.load %arg5[%c0_41, %c0_42] : memref<8x128xf32, #tpu.memory_space<vmem>>, vector<8x128xf32>
    %85 = arith.mulf %83, %84 : vector<8x128xf32>
    %86 = vector.shape_cast %85 : vector<8x128xf32> to vector<8x1x128xf32>
    %87 = vector.broadcast %86 : vector<8x1x128xf32> to vector<8x32x128xf32>
    %88 = arith.mulf %0, %87 : vector<8x32x128xf32>
    %cst_43 = arith.constant dense<0.000000e+00> : vector<8x32xf32>
    %89 = vector.multi_reduction <add>, %88, %cst_43 [2] : vector<8x32x128xf32> to vector<8x32xf32>
    %c0_i32 = arith.constant 0 : i32
    %90 = arith.cmpi eq, %arg1, %c0_i32 : i32
    %91 = arith.extui %90 : i1 to i32
    %c0_i32_44 = arith.constant 0 : i32
    %92 = arith.cmpi ne, %91, %c0_i32_44 : i32
    scf.if %92 {
      %cst_51 = arith.constant 0.000000e+00 : f32
      %97 = vector.broadcast %cst_51 : f32 to vector<1x8x32xf32>
      %c0_52 = arith.constant 0 : index
      %c0_53 = arith.constant 0 : index
      %c0_54 = arith.constant 0 : index
      %98 = vector.load %arg13[%c0_52, %c0_53, %c0_54] : memref<1x8x32xf32, #tpu.memory_space<vmem>>, vector<1x8x32xf32>
      tpu.vector_store %arg13[%c0_52, %c0_53, %c0_54], %97 {strides = array<i32>} : memref<1x8x32xf32, #tpu.memory_space<vmem>>, vector<1x8x32xf32>,
    } else {
    }
    %c0_45 = arith.constant 0 : index
    %c0_46 = arith.constant 0 : index
    %c0_47 = arith.constant 0 : index
    %93 = vector.load %arg13[%c0_45, %c0_46, %c0_47] : memref<1x8x32xf32, #tpu.memory_space<vmem>>, vector<1x8x32xf32>
    %94 = vector.shape_cast %89 : vector<8x32xf32> to vector<1x8x32xf32>
    %95 = arith.addf %93, %94 : vector<1x8x32xf32>
    %c0_48 = arith.constant 0 : index
    %c0_49 = arith.constant 0 : index
    %c0_50 = arith.constant 0 : index
    %96 = vector.load %arg13[%c0_48, %c0_49, %c0_50] : memref<1x8x32xf32, #tpu.memory_space<vmem>>, vector<1x8x32xf32>
    tpu.vector_store %arg13[%c0_48, %c0_49, %c0_50], %95 {strides = array<i32>} : memref<1x8x32xf32, #tpu.memory_space<vmem>>, vector<1x8x32xf32>,
    return
  }
  func.func @transform_0(%arg0: i32, %arg1: i32) -> (i32, i32, i32) {
    %c0_i32 = arith.constant 0 : i32
    %c0_i32_0 = arith.constant 0 : i32
    %c0_i32_1 = arith.constant 0 : i32
    %c0_i32_2 = arith.constant 0 : i32
    return %c0_i32, %c0_i32_0, %c0_i32_1 : i32, i32, i32
  }
  func.func @transform_1(%arg0: i32, %arg1: i32) -> (i32, i32, i32) {
    %c0_i32 = arith.constant 0 : i32
    %c0_i32_0 = arith.constant 0 : i32
    %c0_i32_1 = arith.constant 0 : i32
    %c0_i32_2 = arith.constant 0 : i32
    return %c0_i32, %c0_i32_0, %c0_i32_1 : i32, i32, i32
  }
  func.func @transform_2(%arg0: i32, %arg1: i32) -> (i32, i32, i32) {
    %c2_i32 = arith.constant 2 : i32
    %0 = arith.muli %arg0, %c2_i32 : i32
    %1 = arith.addi %0, %arg1 : i32
    %c0_i32 = arith.constant 0 : i32
    %c0_i32_0 = arith.constant 0 : i32
    %c0_i32_1 = arith.constant 0 : i32
    return %c0_i32, %c0_i32_0, %1 : i32, i32, i32
  }
  func.func @transform_3(%arg0: i32, %arg1: i32) -> (i32, i32) {
    %c2_i32 = arith.constant 2 : i32
    %0 = arith.muli %arg0, %c2_i32 : i32
    %1 = arith.addi %0, %arg1 : i32
    %c0_i32 = arith.constant 0 : i32
    %c0_i32_0 = arith.constant 0 : i32
    return %c0_i32, %1 : i32, i32
  }
  func.func @transform_4(%arg0: i32, %arg1: i32) -> (i32, i32, i32) {
    %c0_i32 = arith.constant 0 : i32
    %c0_i32_0 = arith.constant 0 : i32
    %c0_i32_1 = arith.constant 0 : i32
    %c0_i32_2 = arith.constant 0 : i32
    return %c0_i32, %c0_i32_0, %c0_i32_1 : i32, i32, i32
  }
  func.func @transform_5(%arg0: i32, %arg1: i32) -> (i32, i32, i32) {
    %c0_i32 = arith.constant 0 : i32
    %c0_i32_0 = arith.constant 0 : i32
    %c0_i32_1 = arith.constant 0 : i32
    %c0_i32_2 = arith.constant 0 : i32
    return %c0_i32, %c0_i32_0, %c0_i32_1 : i32, i32, i32
  }
  func.func @transform_6(%arg0: i32, %arg1: i32) -> (i32, i32) {
    %c0_i32 = arith.constant 0 : i32
    %c0_i32_0 = arith.constant 0 : i32
    %c0_i32_1 = arith.constant 0 : i32
    return %c0_i32, %c0_i32_0 : i32, i32
  }
  func.func @transform_7(%arg0: i32, %arg1: i32) -> (i32, i32) {
    %c0_i32 = arith.constant 0 : i32
    %c0_i32_0 = arith.constant 0 : i32
    %c0_i32_1 = arith.constant 0 : i32
    return %c0_i32, %c0_i32_0 : i32, i32
  }
  func.func @transform_8(%arg0: i32, %arg1: i32) -> i32 {
    %c0_i32 = arith.constant 0 : i32
    %c0_i32_0 = arith.constant 0 : i32
    return %c0_i32 : i32
  }
  func.func @transform_9(%arg0: i32, %arg1: i32) -> i32 {
    %c0_i32 = arith.constant 0 : i32
    %c0_i32_0 = arith.constant 0 : i32
    return %c0_i32 : i32
  }
  func.func @transform_10(%arg0: i32, %arg1: i32) -> i32 {
    %c0_i32 = arith.constant 0 : i32
    %c0_i32_0 = arith.constant 0 : i32
    return %c0_i32 : i32
  }
  func.func @transform_11(%arg0: i32, %arg1: i32) -> (i32, i32, i32) {
    %c0_i32 = arith.constant 0 : i32
    %c0_i32_0 = arith.constant 0 : i32
    %c0_i32_1 = arith.constant 0 : i32
    return %arg0, %c0_i32, %c0_i32_0 : i32, i32, i32
  }
}

</mosaic_0001>

<bundles_post_ra>
// kernel: tpu_custom_call.1
= control target key start
LH: loop header
LB: loop body
LE: loop exit
PB: predicated region body
PF: predicated region fallthrough
CT: control target
= control target key end

     0   :  { %s6225_s0 = inlined_call_operand.vmem [shape: f32[8,32,1], index: 0, kind: input, shape index: {}]   ;;  %s6226_s1 = inlined_call_operand.vmem [shape: f32[8,32,1], index: 1, kind: input, shape index: {}]   ;;  %s6227_s2 = inlined_call_operand.vmem [shape: f32[8,32,256], index: 2, kind: input, shape index: {}]   ;;  %s6228_s3 = inlined_call_operand.vmem [shape: f32[8,256], index: 3, kind: input, shape index: {}]   ;;  %s6229_s4 = inlined_call_operand.hbm [shape: f32[8,32,64], index: 4, kind: input, shape index: {}]   ;;  %s6230_s5 = inlined_call_operand.hbm [shape: f32[8,16,32], index: 5, kind: input, shape index: {}]   ;;  %s6231_s6 = inlined_call_operand.vmem [shape: f32[16,1], index: 6, kind: input, shape index: {}]   ;;  %s6232_s7 = inlined_call_operand.vmem [shape: f32[16,1], index: 7, kind: input, shape index: {}]   ;;  %s6233_s8 = inlined_call_operand.<no memory space> [shape: f32[1], index: 8, kind: input, shape index: {}]   ;;  %s6234_s9 = inlined_call_operand.<no memory space> [shape: f32[1], index: 9, kind: input, shape index: {}]   ;;  %s6235_s10 = inlined_call_operand.<no memory space> [shape: f32[1], index: 10, kind: input, shape index: {}]   ;;  %s6236_s11 = inlined_call_operand.hbm [shape: f32[1,8,32], index: 11, kind: output, shape index: {}]  }
   0x1   :  { %16 = sst [smem:[#allocation2]] %s6233_s8 }
   0x2   :  { %17 = sst [smem:[#allocation3]] %s6234_s9 }
   0x3   :  { %18 = sst [smem:[#allocation4]] %s6235_s10 }
   0x4   :  { %19 = vsyncpa [#allocation7], 0 }
   0x5   :  { %20 = vsyncpa [#allocation10], 0 }
   0x6   :  { %21 = vsyncpa [#allocation8], 0  ;;  %s4803_s23 = smov 0   ;;  %s4805_s24 = smov 0  }
   0x7   :  { %s4807_s25 = smov 0   ;;  %s4809_s26 = smov 0  }
   0x8   :  { %s4811_s8 = smov 0  }
   0x9 LB: > { %s6240_s9 = sadd.s32 4294967295, %s4725_s8   ;;  %s36_s10 = sadd.s32 1, %s4721_s26  ;;  %s4725_s8 = sphi %s4811_s8, %s27_s8   ;;  %s4721_s26 = sphi %s4809_s26, %s6309_s26   ;;  %s4717_s25 = sphi %s4807_s25, %s6308_s25   ;;  %s4713_s24 = sphi %s4805_s24, %s6307_s24   ;;  %s4709_s23 = sphi %s4803_s23, %s6306_s23  }
   0xa   : > { %p37_p0 = scmp.ge.s32.totalorder %s36_s10, 2  ;;  %s92_s27 = sadd.s32 1, %s4713_s24 }
   0xb   : > { %p99_p1 = scmp.ne.s32.totalorder %s4713_s24, %s4709_s23  ;;  %p100_p2 = scmp.eq.s32.totalorder %s4725_s8, 0 }
   0xc   : > { %s6311_s10 = smov (%p37_p0, %s36_s10), 0  ;;  %p3715_p4 = scmp.ge.s32.totalorder %s4725_s8, 1 }
   0xd   : > { %6259 = sst [smem:[#allocation15_spill]] %s6311_s10  ;;  %p4836_p3 = por %p100_p2, %p99_p1 }
   0xe   : > { %s89_s29 = ssub.s32 %s4721_s26, %s6311_s10  ;;  %p319_p5 = scmp.lt.s32.totalorder %s4725_s8, 3 }
   0xf   : > { %s6260_s28 = scalar_select %p4836_p3, 1, 0 }
  0x10   : > { %p90_p6 = scmp.eq.s32.totalorder %s89_s29, 0  ;;  %p4844_p7 = pnand %p3715_p4, %p319_p5 }
  0x11   : > { %p4850_p8 = scmp.eq.s32.totalorder %s6240_s9, 0  ;;  %s4727_s14 = smov [#allocation6]  }
  0x12   : > { %s6261_s30 = scalar_select %p4844_p7, 1, 0 }
  0x13   : > { %s6262_s12 = scalar_select %p4850_p8, 1, 0 }
  0x14   : > { %s4855_s13 = scalar_select %p90_p6, %s4713_s24, %s92_s27  }
  0x15   : > { %p4391_p9 = pneg %p4844_p7  ;;  %s337_s15 = sshll.u32 %s4727_s14, 4  ;;  %s338_s15 = int_to_ptr.vmem [resolvable:$true] %s337_s15 }
  0x16   : > { %6263 = sst [smem:[#allocation16_spill]] %s4855_s13  ;;  %s4728_s17 = smov [#allocation9]  }
  0x17   : > { %p4861_p10 = pnand %p4850_p8, %p4391_p9  ;;  %s350_s18 = sshll.u32 %s4728_s17, 4  ;;  %s351_s18 = int_to_ptr.vmem [resolvable:$true] %s350_s18 }
  0x18   : > { %s4593_s21 = scalar_lea.hbm %s6229_s4, 4096 }
  0x19   : > { %p4594_p11 = scmp.ne.s32.totalorder %s6229_s4, %s4593_s21  ;;  %p4595_p12 = pneg %p4861_p10 }
  0x1a   : > { %p4600_p1 = scmp.lt.u32.totalorder %s4593_s21, %s6229_s4 }
  0x1b   : > { %p4596_p13 = pnand %p4595_p12, %p4594_p11 }
  0x1d   : > { %p4597_p0 = pneg %p4596_p13 }
  0x1f   : > { %p4602_p2 = pnand %p4600_p1, %p4597_p0 }
  0x21   : > { %4605 = shalt.err (!%p4602_p2)
}
  0x22   : > { %s4606_s17 = scalar_lea.vmem %s338_s15, 4096  ;;  %p4614_p9 = scmp.lt.s32.totalorder %s338_s15, %s338_s15 }
  0x23   : > { %p4607_p4 = scmp.ne.s32.totalorder %s338_s15, %s4606_s17  ;;  %p4615_p8 = scmp.lt.s32.totalorder %s4606_s17, %s4606_s17 }
  0x25   : > { %p4609_p5 = pnand %p4607_p4, %p4595_p12  ;;  %p4616_p7 = por %p4615_p8, %p4614_p9 }
  0x27   : > { %p4610_p6 = pneg %p4609_p5 }
  0x29   : > { %p4617_p3 = pnand %p4616_p7, %p4610_p6 }
  0x2b   : > { %4620 = shalt.err (!%p4617_p3)
}
  0x2c   : > { %s4729_s19 = smov 128   ;;  %s4730_s20 = smov 8  }
  0x2d   : > { %4394 = dma.hbm_to_vmem [thread:$0]  (!%p4861_p10), %s6229_s4, 4096, %s338_s15, [#allocation7], %s4729_s19, %s4729_s19, %s4730_s20  }
  0x2e   : > { %s4621_s14 = scalar_lea.hbm %s6230_s5, 2048 }
  0x2f   : > { %p4622_p8 = scmp.ne.s32.totalorder %s6230_s5, %s4621_s14  ;;  %p4628_p11 = scmp.lt.u32.totalorder %s4621_s14, %s6230_s5 }
  0x31   : > { %p4624_p3 = pnand %p4622_p8, %p4595_p12 }
  0x33   : > { %p4625_p7 = pneg %p4624_p3 }
  0x35   : > { %p4630_p13 = pnand %p4628_p11, %p4625_p7 }
  0x37   : > { %4633 = shalt.err (!%p4630_p13)
}
  0x38   : > { %s4634_s15 = scalar_lea.vmem %s351_s18, 2048  ;;  %p4642_p4 = scmp.lt.s32.totalorder %s351_s18, %s351_s18 }
  0x39   : > { %p4635_p0 = scmp.ne.s32.totalorder %s351_s18, %s4634_s15  ;;  %p4643_p5 = scmp.lt.s32.totalorder %s4634_s15, %s4634_s15 }
  0x3b   : > { %p4637_p1 = pnand %p4635_p0, %p4595_p12  ;;  %p4644_p6 = por %p4643_p5, %p4642_p4 }
  0x3d   : > { %p4638_p2 = pneg %p4637_p1 }
  0x3f   : > { %p4645_p9 = pnand %p4644_p6, %p4638_p2 }
  0x41   : > { %4648 = shalt.err (!%p4645_p9)
}
  0x42   : > { %4397 = dma.hbm_to_vmem [thread:$0]  (!%p4861_p10), %s6230_s5, 2048, %s351_s18, [#allocation10], %s4729_s19, %s4729_s19, %s4730_s20  }
  0x43   : > { %p3718_p8 = scmp.ge.s32.totalorder %s4725_s8, 2 }
  0x44   : > { %p6265_p3 = scmp.ne.s32.totalorder (!%p3718_p8), %s6260_s28, 0 }
  0x45   : > { %375 = sbr.rel (%p3718_p8) target bundleno = 96 (0x60), region = 52 }
  0x4c   : > { %378 = sbr.rel (!%p6265_p3) target bundleno = 96 (0x60), region = 56  ;;  %s380_s13 = sand.u32 (%p6265_p3), 1, %s4713_s24  }
  0x4d   : > { %s3720_s21 = sshll.u32 (%p6265_p3), %s4721_s26, 3  ;;  %s3719_s22 = sshll.u32 (%p6265_p3), %s380_s13, 8 }
  0x4e   : > { %s4915_s14 = scalar_lea.vmem (%p6265_p3), %s6227_s2, %s3720_s21  ;;  %s4920_s28 = scalar_lea.vmem (%p6265_p3), [#allocation5], %s3719_s22 }
  0x4f   : > { %v476_v0 = vld [vmem:[%s4915_s14] sm:$0xff] (%p6265_p3)  ;;  %v478_v1 = vld [vmem:[%s4915_s14 + $0x10] sm:$0xff] (%p6265_p3) }
  0x50   : > { %v480_v2 = vld [vmem:[%s4915_s14 + $0x20] sm:$0xff] (%p6265_p3)  ;;  %477 = vst [vmem:[%s4920_s28] sm:$0xff] (%p6265_p3), %v476_v0  ;;  %479 = vst [vmem:[%s4920_s28 + $0x8] sm:$0xff] (%p6265_p3), %v478_v1  ;;  %v482_v3 = vld [vmem:[%s4915_s14 + $0x30] sm:$0xff] (%p6265_p3) }
  0x51   : > { %481 = vst [vmem:[%s4920_s28 + $0x10] sm:$0xff] (%p6265_p3), %v480_v2  ;;  %v484_v4 = vld [vmem:[%s4915_s14 + $0x40] sm:$0xff] (%p6265_p3)  ;;  %v486_v5 = vld [vmem:[%s4915_s14 + $0x50] sm:$0xff] (%p6265_p3)  ;;  %483 = vst [vmem:[%s4920_s28 + $0x18] sm:$0xff] (%p6265_p3), %v482_v3 }
  0x52   : > { %485 = vst [vmem:[%s4920_s28 + $0x20] sm:$0xff] (%p6265_p3), %v484_v4  ;;  %487 = vst [vmem:[%s4920_s28 + $0x28] sm:$0xff] (%p6265_p3), %v486_v5  ;;  %v488_v6 = vld [vmem:[%s4915_s14 + $0x60] sm:$0xff] (%p6265_p3)  ;;  %v490_v7 = vld [vmem:[%s4915_s14 + $0x70] sm:$0xff] (%p6265_p3) }
  0x53   : > { %v492_v8 = vld [vmem:[%s4915_s14 + $0x80] sm:$0xff]  ;;  %489 = vst [vmem:[%s4920_s28 + $0x30] sm:$0xff] %v488_v6  ;;  %491 = vst [vmem:[%s4920_s28 + $0x38] sm:$0xff] %v490_v7  ;;  %v494_v9 = vld [vmem:[%s4915_s14 + $0x90] sm:$0xff] }
  0x54   : > { %493 = vst [vmem:[%s4920_s28 + $0x40] sm:$0xff] %v492_v8  ;;  %v496_v10 = vld [vmem:[%s4915_s14 + $0xa0] sm:$0xff]  ;;  %v498_v11 = vld [vmem:[%s4915_s14 + $0xb0] sm:$0xff]  ;;  %495 = vst [vmem:[%s4920_s28 + $0x48] sm:$0xff] %v494_v9 }
  0x55   : > { %497 = vst [vmem:[%s4920_s28 + $0x50] sm:$0xff] %v496_v10  ;;  %499 = vst [vmem:[%s4920_s28 + $0x58] sm:$0xff] %v498_v11  ;;  %v500_v12 = vld [vmem:[%s4915_s14 + $0xc0] sm:$0xff]  ;;  %v502_v13 = vld [vmem:[%s4915_s14 + $0xd0] sm:$0xff] }
  0x56   : > { %v504_v14 = vld [vmem:[%s4915_s14 + $0xe0] sm:$0xff]  ;;  %501 = vst [vmem:[%s4920_s28 + $0x60] sm:$0xff] %v500_v12  ;;  %503 = vst [vmem:[%s4920_s28 + $0x68] sm:$0xff] %v502_v13  ;;  %v506_v15 = vld [vmem:[%s4915_s14 + $0xf0] sm:$0xff] }
  0x57   : > { %505 = vst [vmem:[%s4920_s28 + $0x70] sm:$0xff] %v504_v14  ;;  %v508_v16 = vld [vmem:[%s4915_s14 + $0x100] sm:$0xff]  ;;  %v510_v17 = vld [vmem:[%s4915_s14 + $0x110] sm:$0xff]  ;;  %507 = vst [vmem:[%s4920_s28 + $0x78] sm:$0xff] %v506_v15 }
  0x58   : > { %509 = vst [vmem:[%s4920_s28 + $0x80] sm:$0xff] %v508_v16  ;;  %511 = vst [vmem:[%s4920_s28 + $0x88] sm:$0xff] %v510_v17  ;;  %v512_v18 = vld [vmem:[%s4915_s14 + $0x120] sm:$0xff]  ;;  %v514_v19 = vld [vmem:[%s4915_s14 + $0x130] sm:$0xff] }
  0x59   : > { %v516_v20 = vld [vmem:[%s4915_s14 + $0x140] sm:$0xff]  ;;  %513 = vst [vmem:[%s4920_s28 + $0x90] sm:$0xff] %v512_v18  ;;  %515 = vst [vmem:[%s4920_s28 + $0x98] sm:$0xff] %v514_v19  ;;  %v518_v21 = vld [vmem:[%s4915_s14 + $0x150] sm:$0xff] }
  0x5a   : > { %517 = vst [vmem:[%s4920_s28 + $0xa0] sm:$0xff] %v516_v20  ;;  %v520_v22 = vld [vmem:[%s4915_s14 + $0x160] sm:$0xff]  ;;  %v522_v23 = vld [vmem:[%s4915_s14 + $0x170] sm:$0xff]  ;;  %519 = vst [vmem:[%s4920_s28 + $0xa8] sm:$0xff] %v518_v21 }
  0x5b   : > { %521 = vst [vmem:[%s4920_s28 + $0xb0] sm:$0xff] %v520_v22  ;;  %523 = vst [vmem:[%s4920_s28 + $0xb8] sm:$0xff] %v522_v23  ;;  %v524_v24 = vld [vmem:[%s4915_s14 + $0x180] sm:$0xff]  ;;  %v526_v25 = vld [vmem:[%s4915_s14 + $0x190] sm:$0xff] }
  0x5c   : > { %v528_v26 = vld [vmem:[%s4915_s14 + $0x1a0] sm:$0xff]  ;;  %525 = vst [vmem:[%s4920_s28 + $0xc0] sm:$0xff] %v524_v24  ;;  %527 = vst [vmem:[%s4920_s28 + $0xc8] sm:$0xff] %v526_v25  ;;  %v530_v27 = vld [vmem:[%s4915_s14 + $0x1b0] sm:$0xff] }
  0x5d   : > { %529 = vst [vmem:[%s4920_s28 + $0xd0] sm:$0xff] %v528_v26  ;;  %v532_v28 = vld [vmem:[%s4915_s14 + $0x1c0] sm:$0xff]  ;;  %v534_v29 = vld [vmem:[%s4915_s14 + $0x1d0] sm:$0xff]  ;;  %531 = vst [vmem:[%s4920_s28 + $0xd8] sm:$0xff] %v530_v27 }
  0x5e   : > { %533 = vst [vmem:[%s4920_s28 + $0xe0] sm:$0xff] %v532_v28  ;;  %535 = vst [vmem:[%s4920_s28 + $0xe8] sm:$0xff] %v534_v29  ;;  %v536_v30 = vld [vmem:[%s4915_s14 + $0x1e0] sm:$0xff]  ;;  %v538_v31 = vld [vmem:[%s4915_s14 + $0x1f0] sm:$0xff] }
  0x5f   : > { %537 = vst [vmem:[%s4920_s28 + $0xf0] sm:$0xff] %v536_v30  ;;  %539 = vst [vmem:[%s4920_s28 + $0xf8] sm:$0xff] %v538_v31 }
  0x60 PF: > { %p6266_p10 = scmp.ne.s32.totalorder %s6261_s30, 0 }
  0x62   : > { %559 = sbr.rel (%p6266_p10) target bundleno = 1201 (0x4b1), region = 98 }
  0x69   : > { %s562_s16 = sand.u32 1, %s4709_s23   ;;  %p6267_p12 = scmp.ne.s32.totalorder %s6262_s12, 0 }
  0x6a   : > { %s3722_s18 = sshll.u32 %s562_s16, 8 }
  0x6b   : > { %s4986_s19 = scalar_lea.vmem [#allocation5], %s3722_s18 }
  0x6c   : > { %4696 = dma.done.wait (%p6267_p12), [#allocation7], 4096  }
  0x6d   : > { %4698 = vsyncadd (%p6267_p12), [#allocation7], 4294963200 }
  0x6e   : > { %4700 = dma.done.wait (%p6267_p12), [#allocation10], 2048  }
  0x6f   : > { %4702 = vsyncadd (%p6267_p12), [#allocation10], 4294965248  ;;  %v4731_v32 = vmov 0   ;;  %v656_v33 = vld [vmem:[%s6226_s1 + $0x20] sm:$0xff]  ;;  %v657_v35 = vld [vmem:[%s6226_s1 + $0x28] sm:$0xff]  ;;  %vm1100_vm0 = vcmask 523264  }
  0x70   : > { %4452 = vset.pattern.permute.xlu1 %v4731_v32  ;;  %4451 = vset.pattern.permute.xlu0 %v4731_v32  ;;  %v652_v34 = vld [vmem:[%s6226_s1] sm:$0xff]  ;;  %v653_v36 = vld [vmem:[%s6226_s1 + $0x8] sm:$0xff]  ;;  %v655_v37 = vld [vmem:[%s6226_s1 + $0x18] sm:$0xff]  ;;  %vm2302_vm1 = vcmask 261120   ;;  %s5558_s30 = sld [smem:[#allocation2]]  ;;  %p614_p7 = scmp.lt.s32.totalorder %s4717_s25, 1 }
  0x71   : > { %706 = vperm.xlu1 %4452, %v656_v33   ;;  %686 = vperm.xlu0 %4451, %v652_v34   ;;  %v654_v38 = vld [vmem:[%s6226_s1 + $0x10] sm:$0xff]  ;;  %v659_v39 = vld [vmem:[%s6226_s1 + $0x38] sm:$0xff]  ;;  %v661_v41 = vld [vmem:[%s6226_s1 + $0x48] sm:$0xff]  ;;  %s5856_s23 = sld [smem:[#allocation3]]  ;;  %p3774_p11 = scmp.ne.s32.totalorder %s4717_s25, 0 }
  0x72   : > { %v658_v40 = vld [vmem:[%s6226_s1 + $0x30] sm:$0xff]  ;;  %v660_v42 = vld [vmem:[%s6226_s1 + $0x40] sm:$0xff]  ;;  %v665_v43 = vld [vmem:[%s6226_s1 + $0x68] sm:$0xff]  ;;  %s5915_s15 = sld [smem:[#allocation4]] }
  0x73   : > { %v664_v44 = vld [vmem:[%s6226_s1 + $0x60] sm:$0xff]  ;;  %v663_v47 = vld [vmem:[%s6226_s1 + $0x58] sm:$0xff]  ;;  %v662_v48 = vld [vmem:[%s6226_s1 + $0x50] sm:$0xff]  ;;  %s5923_s9 = scalar_select %p614_p7, %s4717_s25, 1 }
  0x74   : > { %v5033_v45 = vld [vmem:[%s4986_s19 + $0x20] sm:$0xff]  ;;  %v5045_v49 = vld [vmem:[%s4986_s19 + $0x8] sm:$0xff]  ;;  %v5055_v53 = vld [vmem:[%s4986_s19 + $0x10] sm:$0xff] }
  0x75   : > { %711 = vperm.xlu1 %4452, %v657_v35   ;;  %691 = vperm.xlu0 %4451, %v653_v36   ;;  %v5036_v46 = vld [vmem:[%s4986_s19] sm:$0xff]  ;;  %v5050_v51 = vld [vmem:[%s4986_s19 + $0x28] sm:$0xff]  ;;  %v5058_v54 = vld [vmem:[%s4986_s19 + $0x18] sm:$0xff]  ;;  %s3725_s10 = sshll.u32 %s5923_s9, 3 }
  0x76   : > { %v4187_v50 = vpack.c.bf16 %v5045_v49, %v5036_v46  ;;  %v4203_v52 = vpack.c.bf16 %v5050_v51, %v5033_v45  ;;  %v5061_v55 = vld [vmem:[%s4986_s19 + $0x30] sm:$0xff]  ;;  %v4191_v56 = vpack.c.bf16 %v5058_v54, %v5055_v53  ;;  %v5066_v57 = vld [vmem:[%s4986_s19 + $0x38] sm:$0xff]  ;;  %v876_v61 = vld [vmem:[#allocation6] sm:$0xff]  ;;  %s2175_s20 = ssub.f32 1.0, %s5558_s30  ;;  %s617_s21 = scalar_lea.vmem %s6228_s3, %s3725_s10 }
  0x77   : > { %v667_v58 = vld [vmem:[%s6226_s1 + $0x78] sm:$0xff]  ;;  %v666_v59 = vld [vmem:[%s6226_s1 + $0x70] sm:$0xff]  ;;  %v4207_v60 = vpack.c.bf16 %v5066_v57, %v5061_v55  ;;  %v880_v62 = vld [vmem:[#allocation6 + $0x20] sm:$0xff]  ;;  %3939 = vmatprep.mubr.msk.f32.mxu0 %vm1100_vm0, %v876_v61  ;;  %s3100_s17 = ssub.f32 1.0, %s5856_s23 }
  0x78   : > { %4188 = vmatprep.subr.bf16.mxu0 %v4187_v50  ;;  %4204 = vmatprep.subr.bf16.mxu1 %v4203_v52  ;;  %v669_v63 = vld [vmem:[%s6226_s1 + $0x88] sm:$0xff]  ;;  %v668_v0 = vld [vmem:[%s6226_s1 + $0x80] sm:$0xff]  ;;  %v671_v3 = vld [vmem:[%s6226_s1 + $0x98] sm:$0xff] }
  0x79   : > { %701 = vperm.xlu1 %4452, %v655_v37   ;;  %696 = vperm.xlu0 %4451, %v654_v38   ;;  %v673_v1 = vld [vmem:[%s6226_s1 + $0xa8] sm:$0xff]  ;;  %v672_v2 = vld [vmem:[%s6226_s1 + $0xa0] sm:$0xff]  ;;  %v670_v4 = vld [vmem:[%s6226_s1 + $0x90] sm:$0xff] }
  0x7a   : > { %4190 = vmatpush3.bf16.msra.mxu0 %v4187_v50  ;;  %4206 = vmatpush3.bf16.msra.mxu1 %v4203_v52  ;;  %v675_v5 = vld [vmem:[%s6226_s1 + $0xb8] sm:$0xff]  ;;  %v674_v6 = vld [vmem:[%s6226_s1 + $0xb0] sm:$0xff]  ;;  %v677_v7 = vld [vmem:[%s6226_s1 + $0xc8] sm:$0xff] }
  0x7b   : > { %4192 = vmatprep.subr.bf16.mxu0 %v4191_v56  ;;  %4208 = vmatprep.subr.bf16.mxu1 %v4207_v60  ;;  %v676_v8 = vld [vmem:[%s6226_s1 + $0xc0] sm:$0xff]  ;;  %v681_v9 = vld [vmem:[%s6226_s1 + $0xe8] sm:$0xff]  ;;  %v679_v11 = vld [vmem:[%s6226_s1 + $0xd8] sm:$0xff] }
  0x7c   : > { %3961 = vmatprep.mubr.msk.f32.mxu1 %vm1100_vm0, %v880_v62  ;;  %v680_v10 = vld [vmem:[%s6226_s1 + $0xe0] sm:$0xff]  ;;  %v678_v12 = vld [vmem:[%s6226_s1 + $0xd0] sm:$0xff]  ;;  %v683_v13 = vld [vmem:[%s6226_s1 + $0xf8] sm:$0xff] }
  0x7d   : > { %721 = vperm.xlu1 %4452, %v659_v39   ;;  %716 = vperm.xlu0 %4451, %v658_v40   ;;  %v682_v14 = vld [vmem:[%s6226_s1 + $0xf0] sm:$0xff]  ;;  %v909_v15 = vld [vmem:[%s6225_s0 + $0x8] sm:$0xff]  ;;  %v908_v16 = vld [vmem:[%s6225_s0] sm:$0xff] }
  0x7e   : > { %4194 = vmatpush3.bf16.msra.mxu0 %v4191_v56  ;;  %4210 = vmatpush3.bf16.msra.mxu1 %v4207_v60  ;;  %v913_v17 = vld [vmem:[%s6225_s0 + $0x28] sm:$0xff]  ;;  %v912_v18 = vld [vmem:[%s6225_s0 + $0x20] sm:$0xff]  ;;  %v911_v21 = vld [vmem:[%s6225_s0 + $0x18] sm:$0xff] }
  0x7f   : > { %v917_v19 = vld [vmem:[%s6225_s0 + $0x48] sm:$0xff]  ;;  %v916_v20 = vld [vmem:[%s6225_s0 + $0x40] sm:$0xff]  ;;  %v910_v22 = vld [vmem:[%s6225_s0 + $0x10] sm:$0xff] }
  0x80   : > { %v915_v23 = vld [vmem:[%s6225_s0 + $0x38] sm:$0xff]  ;;  %v914_v24 = vld [vmem:[%s6225_s0 + $0x30] sm:$0xff]  ;;  %v921_v25 = vld [vmem:[%s6225_s0 + $0x68] sm:$0xff] }
  0x81   : > { %731 = vperm.xlu1 %4452, %v661_v41   ;;  %726 = vperm.xlu0 %4451, %v660_v42   ;;  %v920_v26 = vld [vmem:[%s6225_s0 + $0x60] sm:$0xff]  ;;  %v919_v27 = vld [vmem:[%s6225_s0 + $0x58] sm:$0xff]  ;;  %v918_v28 = vld [vmem:[%s6225_s0 + $0x50] sm:$0xff] }
  0x82   : > { %v925_v29 = vld [vmem:[%s6225_s0 + $0x88] sm:$0xff]  ;;  %v924_v30 = vld [vmem:[%s6225_s0 + $0x80] sm:$0xff]  ;;  %v923_v31 = vld [vmem:[%s6225_s0 + $0x78] sm:$0xff] }
  0x83   : > { %v922_v32 = vld [vmem:[%s6225_s0 + $0x70] sm:$0xff]  ;;  %v929_v33 = vld [vmem:[%s6225_s0 + $0xa8] sm:$0xff]  ;;  %v928_v34 = vld [vmem:[%s6225_s0 + $0xa0] sm:$0xff] }
  0x84   : > { %v927_v35 = vld [vmem:[%s6225_s0 + $0x98] sm:$0xff]  ;;  %v926_v36 = vld [vmem:[%s6225_s0 + $0x90] sm:$0xff]  ;;  %v933_v37 = vld [vmem:[%s6225_s0 + $0xc8] sm:$0xff] }
  0x85   : > { %751 = vperm.xlu1 %4452, %v665_v43   ;;  %746 = vperm.xlu0 %4451, %v664_v44   ;;  %v932_v38 = vld [vmem:[%s6225_s0 + $0xc0] sm:$0xff]  ;;  %v931_v39 = vld [vmem:[%s6225_s0 + $0xb8] sm:$0xff]  ;;  %v930_v40 = vld [vmem:[%s6225_s0 + $0xb0] sm:$0xff] }
  0x86   : > { %v937_v41 = vld [vmem:[%s6225_s0 + $0xe8] sm:$0xff]  ;;  %v936_v42 = vld [vmem:[%s6225_s0 + $0xe0] sm:$0xff]  ;;  %v935_v43 = vld [vmem:[%s6225_s0 + $0xd8] sm:$0xff] }
  0x87   : > { %v934_v44 = vld [vmem:[%s6225_s0 + $0xd0] sm:$0xff]  ;;  %v2291_v50 = vld [vmem:[%s6231_s6 + $0x8] sm:$0xff]  ;;  %v2290_v52 = vld [vmem:[%s6231_s6] sm:$0xff] }
  0x88   : > { %v3151_v60 = vld [vmem:[%s6232_s7] sm:$0xff] }
  0x89   : > { %741 = vperm.xlu1 %4452, %v663_v47   ;;  %736 = vperm.xlu0 %4451, %v662_v48   ;;  %v939_v47 = vld [vmem:[%s6225_s0 + $0xf8] sm:$0xff]  ;;  %v938_v48 = vld [vmem:[%s6225_s0 + $0xf0] sm:$0xff] }
  0x8d   : > { %761 = vperm.xlu1 %4452, %v667_v58   ;;  %756 = vperm.xlu0 %4451, %v666_v59   ;;  %v3152_v59 = vld [vmem:[%s6232_s7 + $0x8] sm:$0xff] }
  0x91   : > { %771 = vperm.xlu1 %4452, %v669_v63   ;;  %766 = vperm.xlu0 %4451, %v668_v0  }
  0x95   : > { %791 = vperm.xlu1 %4452, %v673_v1   ;;  %786 = vperm.xlu0 %4451, %v672_v2  }
  0x99   : > { %781 = vperm.xlu1 %4452, %v671_v3   ;;  %776 = vperm.xlu0 %4451, %v670_v4  }
  0x9d   : > { %801 = vperm.xlu1 %4452, %v675_v5   ;;  %796 = vperm.xlu0 %4451, %v674_v6  }
  0xa1   : > { %811 = vperm.xlu1 %4452, %v677_v7   ;;  %806 = vperm.xlu0 %4451, %v676_v8   ;;  %v629_v7 = vld [vmem:[%s4986_s19 + $0x48] sm:$0xff]  ;;  %v628_v8 = vld [vmem:[%s4986_s19 + $0x40] sm:$0xff] }
  0xa5   : > { %831 = vperm.xlu1 %4452, %v681_v9   ;;  %826 = vperm.xlu0 %4451, %v680_v10  }
  0xa9   : > { %821 = vperm.xlu1 %4452, %v679_v11   ;;  %816 = vperm.xlu0 %4451, %v678_v12   ;;  %v630_v11 = vld [vmem:[%s4986_s19 + $0x50] sm:$0xff]  ;;  %v631_v12 = vld [vmem:[%s4986_s19 + $0x58] sm:$0xff] }
  0xad   : > { %841 = vperm.xlu1 %4452, %v683_v13   ;;  %836 = vperm.xlu0 %4451, %v682_v14  }
  0xb1   : > { %947 = vperm.xlu1 %4452, %v909_v15   ;;  %942 = vperm.xlu0 %4451, %v908_v16   ;;  %v632_v15 = vld [vmem:[%s4986_s19 + $0x60] sm:$0xff] }
  0xb5   : > { %967 = vperm.xlu1 %4452, %v913_v17   ;;  %962 = vperm.xlu0 %4451, %v912_v18   ;;  %v4223_v17 = vpack.c.bf16 %v631_v12, %v630_v11 }
  0xb9   : > { %987 = vperm.xlu1 %4452, %v917_v19   ;;  %982 = vperm.xlu0 %4451, %v916_v20   ;;  %v878_v20 = vld [vmem:[#allocation6 + $0x10] sm:$0xff] }
  0xbd   : > { %957 = vperm.xlu1 %4452, %v911_v21   ;;  %952 = vperm.xlu0 %4451, %v910_v22  }
  0xc1   : > { %977 = vperm.xlu1 %4452, %v915_v23   ;;  %972 = vperm.xlu0 %4451, %v914_v24   ;;  %v879_v24 = vld [vmem:[#allocation6 + $0x18] sm:$0xff] }
  0xc5   : > { %1007 = vperm.xlu1 %4452, %v921_v25   ;;  %1002 = vperm.xlu0 %4451, %v920_v26   ;;  %v881_v25 = vld [vmem:[#allocation6 + $0x28] sm:$0xff] }
  0xc9   : > { %997 = vperm.xlu1 %4452, %v919_v27   ;;  %992 = vperm.xlu0 %4451, %v918_v28   ;;  %v882_v28 = vld [vmem:[#allocation6 + $0x30] sm:$0xff] }
  0xcd   : > { %1027 = vperm.xlu1 %4452, %v925_v29   ;;  %1022 = vperm.xlu0 %4451, %v924_v30  }
  0xd1   : > { %1017 = vperm.xlu1 %4452, %v923_v31   ;;  %1012 = vperm.xlu0 %4451, %v922_v32  }
  0xd5   : > { %1047 = vperm.xlu1 %4452, %v929_v33   ;;  %1042 = vperm.xlu0 %4451, %v928_v34   ;;  %v884_v33 = vld [vmem:[#allocation6 + $0x40] sm:$0xff]  ;;  %v883_v34 = vld [vmem:[#allocation6 + $0x38] sm:$0xff] }
  0xd9   : > { %1037 = vperm.xlu1 %4452, %v927_v35   ;;  %1032 = vperm.xlu0 %4451, %v926_v36  }
  0xdd   : > { %1067 = vperm.xlu1 %4452, %v933_v37   ;;  %1062 = vperm.xlu0 %4451, %v932_v38   ;;  %v637_v37 = vld [vmem:[%s4986_s19 + $0x88] sm:$0xff]  ;;  %v636_v38 = vld [vmem:[%s4986_s19 + $0x80] sm:$0xff] }
  0xe1   : > { %1057 = vperm.xlu1 %4452, %v931_v39   ;;  %1052 = vperm.xlu0 %4451, %v930_v40   ;;  %v888_v39 = vld [vmem:[#allocation6 + $0x60] sm:$0xff] }
  0xe5   : > { %1087 = vperm.xlu1 %4452, %v937_v41   ;;  %1082 = vperm.xlu0 %4451, %v936_v42  }
  0xe9   : > { %1077 = vperm.xlu1 %4452, %v935_v43   ;;  %1072 = vperm.xlu0 %4451, %v934_v44   ;;  %v4251_v44 = vpack.c.bf16 %v637_v37, %v636_v38 }
  0xed   : > { %1097 = vperm.xlu1 %4452, %v939_v47   ;;  %1092 = vperm.xlu0 %4451, %v938_v48  }
  0xf0   : > { %v707_v56 = vpop.permute.xlu1 %706  ;;  %v687_v58 = vpop.permute.xlu0 %686 }
  0xf1   : > { %2299 = vperm.xlu1 %4452, %v2291_v50   ;;  %2294 = vperm.xlu0 %4451, %v2290_v52   ;;  %v848_v61 = vmul.f32 %v707_v56, %v5033_v45  ;;  %v844_v0 = vmul.f32 %v687_v58, %v5036_v46  ;;  %v638_v50 = vld [vmem:[%s4986_s19 + $0x90] sm:$0xff]  ;;  %v639_v52 = vld [vmem:[%s4986_s19 + $0x98] sm:$0xff] }
  0xf4   : > { %v712_v62 = vpop.permute.xlu1 %711  ;;  %v692_v63 = vpop.permute.xlu0 %691 }
  0xf5   : > { %v849_v1 = vmul.f32 %v712_v62, %v5050_v51  ;;  %v845_v2 = vmul.f32 %v692_v63, %v5045_v49  ;;  %3160 = vperm.xlu1 %4452, %v3152_v59   ;;  %3155 = vperm.xlu0 %4451, %v3151_v60   ;;  %v4219_v51 = vpack.c.bf16 %v629_v7, %v628_v8  ;;  %v641_v59 = vld [vmem:[%s4986_s19 + $0xa8] sm:$0xff]  ;;  %v640_v60 = vld [vmem:[%s4986_s19 + $0xa0] sm:$0xff] }
  0xf6   : > { %v4255_v63 = vpack.c.bf16 %v639_v52, %v638_v50 }
  0xf7   : > { %v4211_v3 = vpack.c.bf16 %v849_v1, %v848_v61  ;;  %v4195_v4 = vpack.c.bf16 %v845_v2, %v844_v0  ;;  %v885_v61 = vld [vmem:[#allocation6 + $0x48] sm:$0xff]  ;;  %v886_v2 = vld [vmem:[#allocation6 + $0x50] sm:$0xff] }
  0xf8   : > { %v702_v5 = vpop.permute.xlu1 %701  ;;  %v697_v6 = vpop.permute.xlu0 %696 }
  0xf9   : > { %v847_v45 = vmul.f32 %v702_v5, %v5058_v54  ;;  %v846_v46 = vmul.f32 %v697_v6, %v5055_v53  ;;  %4196 = vmatprep.subr.bf16.mxu0 %v4195_v4  ;;  %4212 = vmatprep.subr.bf16.mxu1 %v4211_v3  ;;  %v633_v54 = vld [vmem:[%s4986_s19 + $0x68] sm:$0xff]  ;;  %v642_v6 = vld [vmem:[%s4986_s19 + $0xb0] sm:$0xff] }
  0xfa   : > { %4198 = vmatpush3.bf16.msra.mxu0 %v4195_v4  ;;  %4214 = vmatpush3.bf16.msra.mxu1 %v4211_v3  ;;  %v877_v53 = vld [vmem:[#allocation6 + $0x8] sm:$0xff]  ;;  %v4235_v21 = vpack.c.bf16 %v633_v54, %v632_v15  ;;  %v4267_v3 = vpack.c.bf16 %v641_v59, %v640_v60 }
  0xfb   : > { %v4199_v49 = vpack.c.bf16 %v847_v45, %v846_v46  ;;  %v889_v45 = vld [vmem:[#allocation6 + $0x68] sm:$0xff] }
  0xfc   : > { %v722_v9 = vpop.permute.xlu1 %721  ;;  %v717_v10 = vpop.permute.xlu0 %716 }
  0xfd   : > { %v851_v13 = vmul.f32 %v722_v9, %v5066_v57  ;;  %v850_v14 = vmul.f32 %v717_v10, %v5061_v55  ;;  %4200 = vmatprep.subr.bf16.mxu0 %v4199_v49  ;;  %v634_v55 = vld [vmem:[%s4986_s19 + $0x70] sm:$0xff]  ;;  %v635_v57 = vld [vmem:[%s4986_s19 + $0x78] sm:$0xff] }
  0xfe   : > { %4202 = vmatpush3.bf16.msra.mxu0 %v4199_v49  ;;  %v4239_v29 = vpack.c.bf16 %v635_v57, %v634_v55 }
  0xff   : > { %v4215_v16 = vpack.c.bf16 %v851_v13, %v850_v14  ;;  %4220 = vmatprep.subr.bf16.mxu0 %v4219_v51  ;;  %v892_v13 = vld [vmem:[#allocation6 + $0x80] sm:$0xff]  ;;  %v891_v14 = vld [vmem:[#allocation6 + $0x78] sm:$0xff] }
 0x100   : > { %v732_v18 = vpop.permute.xlu1 %731  ;;  %v727_v19 = vpop.permute.xlu0 %726 }
 0x101   : > { %v853_v22 = vmul.f32 %v732_v18, %v629_v7  ;;  %v852_v23 = vmul.f32 %v727_v19, %v628_v8  ;;  %3940 = vmatmul.mubr.msk.f32.vlgmr.msra.gmra.mrb[0].mxu0 %vm1100_vm0, %v877_v53  ;;  %4216 = vmatprep.subr.bf16.mxu1 %v4215_v16  ;;  %v643_v7 = vld [vmem:[%s4986_s19 + $0xb8] sm:$0xff]  ;;  %v645_v53 = vld [vmem:[%s4986_s19 + $0xc8] sm:$0xff] }
 0x102   : > { %4218 = vmatpush3.bf16.msra.mxu1 %v4215_v16  ;;  %4222 = vmatpush3.bf16.msra.mxu0 %v4219_v51  ;;  %v887_v8 = vld [vmem:[#allocation6 + $0x58] sm:$0xff]  ;;  %v890_v51 = vld [vmem:[#allocation6 + $0x70] sm:$0xff]  ;;  %v4271_v9 = vpack.c.bf16 %v643_v7, %v642_v6  ;;  %v644_v16 = vld [vmem:[%s4986_s19 + $0xc0] sm:$0xff] }
 0x103   : > { %3942 = vmatprep.mubr.msk.f32.mxu0 %vm1100_vm0, %v878_v20  ;;  %4224 = vmatprep.subr.bf16.mxu0 %v4223_v17  ;;  %v4227_v30 = vpack.c.bf16 %v853_v22, %v852_v23  ;;  %v4283_v22 = vpack.c.bf16 %v645_v53, %v644_v16 }
 0x104   : > { %v752_v26 = vpop.permute.xlu1 %751  ;;  %v747_v27 = vpop.permute.xlu0 %746  ;;  %4236 = vmatprep.subr.bf16.mxu1 %v4235_v21 }
 0x105   : > { %v857_v31 = vmul.f32 %v752_v26, %v633_v54  ;;  %v856_v32 = vmul.f32 %v747_v27, %v632_v15  ;;  %3943 = vmatmul.mubr.msk.f32.gmra.mrb[2].mxu0 %vm1100_vm0, %v879_v24  ;;  %3962 = vmatmul.mubr.msk.f32.vlgmr.msra.gmra.mrb[0].mxu1 %vm1100_vm0, %v881_v25  ;;  %v647_v24 = vld [vmem:[%s4986_s19 + $0xd8] sm:$0xff]  ;;  %v649_v27 = vld [vmem:[%s4986_s19 + $0xe8] sm:$0xff] }
 0x106   : > { %4226 = vmatpush3.bf16.msra.mxu0 %v4223_v17  ;;  %4238 = vmatpush3.bf16.msra.mxu1 %v4235_v21  ;;  %v896_v17 = vld [vmem:[#allocation6 + $0xa0] sm:$0xff] }
 0x107   : > { %4228 = vmatprep.subr.bf16.mxu0 %v4227_v30  ;;  %3964 = vmatprep.mubr.msk.f32.mxu1 %vm1100_vm0, %v882_v28  ;;  %v4243_v40 = vpack.c.bf16 %v857_v31, %v856_v32  ;;  %v648_v28 = vld [vmem:[%s4986_s19 + $0xe0] sm:$0xff] }
 0x108   : > { %v742_v35 = vpop.permute.xlu1 %741  ;;  %v737_v36 = vpop.permute.xlu0 %736  ;;  %4240 = vmatprep.subr.bf16.mxu1 %v4239_v29  ;;  %3983 = vmatprep.mubr.msk.f32.mxu0 %vm1100_vm0, %v884_v33 }
 0x109   : > { %v855_v41 = vmul.f32 %v742_v35, %v631_v12  ;;  %v854_v42 = vmul.f32 %v737_v36, %v630_v11  ;;  %3965 = vmatmul.mubr.msk.f32.gmra.mrb[2].mxu1 %vm1100_vm0, %v883_v34  ;;  %v894_v34 = vld [vmem:[#allocation6 + $0x90] sm:$0xff]  ;;  %v4299_v35 = vpack.c.bf16 %v649_v27, %v648_v28 }
 0x10a   : > { %4230 = vmatpush3.bf16.msra.mxu0 %v4227_v30  ;;  %4242 = vmatpush3.bf16.msra.mxu1 %v4239_v29  ;;  %v893_v29 = vld [vmem:[#allocation6 + $0x88] sm:$0xff] }
 0x10b   : > { %v4231_v43 = vpack.c.bf16 %v855_v41, %v854_v42  ;;  %4244 = vmatprep.subr.bf16.mxu1 %v4243_v40  ;;  %4005 = vmatprep.mubr.msk.f32.mxu1 %vm1100_vm0, %v888_v39  ;;  %v651_v39 = vld [vmem:[%s4986_s19 + $0xf8] sm:$0xff]  ;;  %v897_v41 = vld [vmem:[#allocation6 + $0xa8] sm:$0xff] }
 0x10c   : > { %v762_v47 = vpop.permute.xlu1 %761  ;;  %v757_v48 = vpop.permute.xlu0 %756 }
 0x10d   : > { %v859_v56 = vmul.f32 %v762_v47, %v635_v57  ;;  %v858_v58 = vmul.f32 %v757_v48, %v634_v55  ;;  %4232 = vmatprep.subr.bf16.mxu0 %v4231_v43  ;;  %v646_v57 = vld [vmem:[%s4986_s19 + $0xd0] sm:$0xff] }
 0x10e   : > { %4234 = vmatpush3.bf16.msra.mxu0 %v4231_v43  ;;  %4246 = vmatpush3.bf16.msra.mxu1 %v4243_v40  ;;  %v4287_v31 = vpack.c.bf16 %v647_v24, %v646_v57  ;;  %v895_v40 = vld [vmem:[#allocation6 + $0x98] sm:$0xff] }
 0x10f   : > { %v4247_v62 = vpack.c.bf16 %v859_v56, %v858_v58  ;;  %4252 = vmatprep.subr.bf16.mxu0 %v4251_v44  ;;  %v900_v56 = vld [vmem:[#allocation6 + $0xc0] sm:$0xff]  ;;  %v899_v58 = vld [vmem:[#allocation6 + $0xb8] sm:$0xff] }
 0x110   : > { %v772_v0 = vpop.permute.xlu1 %771  ;;  %v767_v1 = vpop.permute.xlu0 %766 }
 0x111   : > { %v861_v4 = vmul.f32 %v772_v0, %v637_v37  ;;  %v860_v5 = vmul.f32 %v767_v1, %v636_v38  ;;  %3984 = vmatmul.mubr.msk.f32.vlgmr.msra.gmra.mrb[4].mxu0 %vm1100_vm0, %v885_v61  ;;  %4248 = vmatprep.subr.bf16.mxu1 %v4247_v62  ;;  %v650_v38 = vld [vmem:[%s4986_s19 + $0xf0] sm:$0xff]  ;;  %v904_v61 = vld [vmem:[#allocation6 + $0xe0] sm:$0xff] }
 0x112   : > { %4250 = vmatpush3.bf16.msra.mxu1 %v4247_v62  ;;  %4254 = vmatpush3.bf16.msra.mxu0 %v4251_v44  ;;  %v898_v44 = vld [vmem:[#allocation6 + $0xb0] sm:$0xff]  ;;  %v4303_v47 = vpack.c.bf16 %v651_v39, %v650_v38 }
 0x113   : > { %3986 = vmatprep.mubr.msk.f32.mxu0 %vm1100_vm0, %v886_v2  ;;  %4256 = vmatprep.subr.bf16.mxu0 %v4255_v63  ;;  %v4259_v10 = vpack.c.bf16 %v861_v4, %v860_v5 }
 0x114   : > { %v792_v46 = vpop.permute.xlu1 %791  ;;  %v787_v49 = vpop.permute.xlu0 %786  ;;  %4268 = vmatprep.subr.bf16.mxu1 %v4267_v3 }
 0x115   : > { %v865_v11 = vmul.f32 %v792_v46, %v641_v59  ;;  %v864_v12 = vmul.f32 %v787_v49, %v640_v60  ;;  %3987 = vmatmul.mubr.msk.f32.gmra.mrb[6].mxu0 %vm1100_vm0, %v887_v8  ;;  %4006 = vmatmul.mubr.msk.f32.vlgmr.msra.gmra.mrb[4].mxu1 %vm1100_vm0, %v889_v45  ;;  %v902_v8 = vld [vmem:[#allocation6 + $0xd0] sm:$0xff]  ;;  %v903_v45 = vld [vmem:[#allocation6 + $0xd8] sm:$0xff]  ;;  %v905_v46 = vld [vmem:[#allocation6 + $0xe8] sm:$0xff] }
 0x116   : > { %4258 = vmatpush3.bf16.msra.mxu0 %v4255_v63  ;;  %4270 = vmatpush3.bf16.msra.mxu1 %v4267_v3  ;;  %v906_v49 = vld [vmem:[#allocation6 + $0xf0] sm:$0xff] }
 0x117   : > { %4260 = vmatprep.subr.bf16.mxu0 %v4259_v10  ;;  %4008 = vmatprep.mubr.msk.f32.mxu1 %vm1100_vm0, %v890_v51  ;;  %v4275_v18 = vpack.c.bf16 %v865_v11, %v864_v12  ;;  %v907_v51 = vld [vmem:[#allocation6 + $0xf8] sm:$0xff] }
 0x118   : > { %v782_v54 = vpop.permute.xlu1 %781  ;;  %v777_v15 = vpop.permute.xlu0 %776  ;;  %4272 = vmatprep.subr.bf16.mxu1 %v4271_v9  ;;  %4027 = vmatprep.mubr.msk.f32.mxu0 %vm1100_vm0, %v892_v13 }
 0x119   : > { %v863_v19 = vmul.f32 %v782_v54, %v639_v52  ;;  %v862_v20 = vmul.f32 %v777_v15, %v638_v50  ;;  %4009 = vmatmul.mubr.msk.f32.gmra.mrb[6].mxu1 %vm1100_vm0, %v891_v14 }
 0x11a   : > { %4262 = vmatpush3.bf16.msra.mxu0 %v4259_v10  ;;  %4274 = vmatpush3.bf16.msra.mxu1 %v4271_v9 }
 0x11b   : > { %v4263_v21 = vpack.c.bf16 %v863_v19, %v862_v20  ;;  %4276 = vmatprep.subr.bf16.mxu1 %v4275_v18  ;;  %4049 = vmatprep.mubr.msk.f32.mxu1 %vm1100_vm0, %v896_v17 }
 0x11c   : > { %v802_v23 = vpop.permute.xlu1 %801  ;;  %v797_v55 = vpop.permute.xlu0 %796 }
 0x11d   : > { %v867_v25 = vmul.f32 %v802_v23, %v643_v7  ;;  %v866_v26 = vmul.f32 %v797_v55, %v642_v6  ;;  %4264 = vmatprep.subr.bf16.mxu0 %v4263_v21  ;;  %v901_v6 = vld [vmem:[#allocation6 + $0xc8] sm:$0xff] }
 0x11e   : > { %4266 = vmatpush3.bf16.msra.mxu0 %v4263_v21  ;;  %4278 = vmatpush3.bf16.msra.mxu1 %v4275_v18 }
 0x11f   : > { %v4279_v30 = vpack.c.bf16 %v867_v25, %v866_v26  ;;  %4284 = vmatprep.subr.bf16.mxu0 %v4283_v22 }
 0x120   : > { %v812_v32 = vpop.permute.xlu1 %811  ;;  %v807_v33 = vpop.permute.xlu0 %806 }
 0x121   : > { %v869_v36 = vmul.f32 %v812_v32, %v645_v53  ;;  %v868_v37 = vmul.f32 %v807_v33, %v644_v16  ;;  %4028 = vmatmul.mubr.msk.f32.vlgmr.msra.gmra.mrb[8].mxu0 %vm1100_vm0, %v893_v29  ;;  %4280 = vmatprep.subr.bf16.mxu1 %v4279_v30 }
 0x122   : > { %4282 = vmatpush3.bf16.msra.mxu1 %v4279_v30  ;;  %4286 = vmatpush3.bf16.msra.mxu0 %v4283_v22  ;;  %v2274_v30 = vld [vmem:[#allocation9] sm:$0xff] }
 0x123   : > { %4030 = vmatprep.mubr.msk.f32.mxu0 %vm1100_vm0, %v894_v34  ;;  %4288 = vmatprep.subr.bf16.mxu0 %v4287_v31  ;;  %v4291_v48 = vpack.c.bf16 %v869_v36, %v868_v37 }
 0x124   : > { %v832_v42 = vpop.permute.xlu1 %831  ;;  %v827_v43 = vpop.permute.xlu0 %826  ;;  %4300 = vmatprep.subr.bf16.mxu1 %v4299_v35 }
 0x125   : > { %v873_v50 = vmul.f32 %v832_v42, %v649_v27  ;;  %v872_v52 = vmul.f32 %v827_v43, %v648_v28  ;;  %4031 = vmatmul.mubr.msk.f32.gmra.mrb[10].mxu0 %vm1100_vm0, %v895_v40  ;;  %4050 = vmatmul.mubr.msk.f32.vlgmr.msra.gmra.mrb[8].mxu1 %vm1100_vm0, %v897_v41 }
 0x126   : > { %4290 = vmatpush3.bf16.msra.mxu0 %v4287_v31  ;;  %4302 = vmatpush3.bf16.msra.mxu1 %v4299_v35  ;;  %v2276_v31 = vld [vmem:[#allocation9 + $0x10] sm:$0xff] }
 0x127   : > { %4292 = vmatprep.subr.bf16.mxu0 %v4291_v48  ;;  %4052 = vmatprep.mubr.msk.f32.mxu1 %vm1100_vm0, %v898_v44  ;;  %v4307_v62 = vpack.c.bf16 %v873_v50, %v872_v52 }
 0x128   : > { %v822_v59 = vpop.permute.xlu1 %821  ;;  %v817_v60 = vpop.permute.xlu0 %816  ;;  %4304 = vmatprep.subr.bf16.mxu1 %v4303_v47  ;;  %4071 = vmatprep.mubr.msk.f32.mxu0 %vm1100_vm0, %v900_v56 }
 0x129   : > { %v871_v63 = vmul.f32 %v822_v59, %v647_v24  ;;  %v870_v0 = vmul.f32 %v817_v60, %v646_v57  ;;  %4053 = vmatmul.mubr.msk.f32.gmra.mrb[10].mxu1 %vm1100_vm0, %v899_v58 }
 0x12a   : > { %4294 = vmatpush3.bf16.msra.mxu0 %v4291_v48  ;;  %4306 = vmatpush3.bf16.msra.mxu1 %v4303_v47 }
 0x12b   : > { %v4295_v1 = vpack.c.bf16 %v871_v63, %v870_v0  ;;  %4308 = vmatprep.subr.bf16.mxu1 %v4307_v62  ;;  %4093 = vmatprep.mubr.msk.f32.mxu1 %vm1100_vm0, %v904_v61 }
 0x12c   : > { %v842_v2 = vpop.permute.xlu1 %841  ;;  %v837_v3 = vpop.permute.xlu0 %836 }
 0x12d   : > { %v875_v4 = vmul.f32 %v842_v2, %v651_v39  ;;  %v874_v5 = vmul.f32 %v837_v3, %v650_v38  ;;  %4296 = vmatprep.subr.bf16.mxu0 %v4295_v1 }
 0x12e   : > { %4298 = vmatpush3.bf16.msra.mxu0 %v4295_v1  ;;  %4310 = vmatpush3.bf16.msra.mxu1 %v4307_v62 }
 0x12f   : > { %v4311_v7 = vpack.c.bf16 %v875_v4, %v874_v5 }
 0x130   : > { %v948_v9 = vpop.permute.xlu1 %947  ;;  %v943_v10 = vpop.permute.xlu0 %942 }
 0x131   : > { %4072 = vmatmul.mubr.msk.f32.vlgmr.msra.gmra.mrb[12].mxu0 %vm1100_vm0, %v901_v6  ;;  %4312 = vmatprep.subr.bf16.mxu1 %v4311_v7 }
 0x132   : > { %4314 = vmatpush3.bf16.msra.mxu1 %v4311_v7  ;;  %4074 = vmatprep.mubr.msk.f32.mxu0 %vm1100_vm0, %v902_v8 }
 0x134   : > { %v968_v11 = vpop.permute.xlu1 %967  ;;  %v963_v12 = vpop.permute.xlu0 %962 }
 0x135   : > { %4075 = vmatmul.mubr.msk.f32.gmra.mrb[14].mxu0 %vm1100_vm0, %v903_v45  ;;  %4094 = vmatmul.mubr.msk.f32.vlgmr.msra.gmra.mrb[12].mxu1 %vm1100_vm0, %v905_v46 }
 0x136   : > { %4096 = vmatprep.mubr.msk.f32.mxu1 %vm1100_vm0, %v906_v49  ;;  %4107 = vmatprep.mubr.msk.f32.mxu0 %vm2302_vm1, %v2274_v30 }
 0x138   : > { %v988_v13 = vpop.permute.xlu1 %987  ;;  %v983_v14 = vpop.permute.xlu0 %982 }
 0x139   : > { %4097 = vmatmul.mubr.msk.f32.gmra.mrb[14].mxu1 %vm1100_vm0, %v907_v51 }
 0x13a   : > { %4118 = vmatprep.mubr.msk.f32.mxu1 %vm2302_vm1, %v2276_v31 }
 0x13c   : > { %v5296_v54 = vpop.permute.xlu1 %957  ;;  %v5298_v15 = vpop.permute.xlu0 %952 }
 0x140   : > { %v978_v53 = vpop.permute.xlu1 %977  ;;  %v973_v16 = vpop.permute.xlu0 %972 }
 0x144   : > { %v1008_v17 = vpop.permute.xlu1 %1007  ;;  %v1003_v19 = vpop.permute.xlu0 %1002 }
 0x148   : > { %v998_v57 = vpop.permute.xlu1 %997  ;;  %v993_v24 = vpop.permute.xlu0 %992 }
 0x14c   : > { %v1028_v27 = vpop.permute.xlu1 %1027  ;;  %v1023_v28 = vpop.permute.xlu0 %1022 }
 0x150   : > { %v1018_v33 = vpop.permute.xlu1 %1017  ;;  %v1013_v34 = vpop.permute.xlu0 %1012 }
 0x154   : > { %v1048_v41 = vpop.permute.xlu1 %1047  ;;  %v1043_v42 = vpop.permute.xlu0 %1042 }
 0x158   : > { %v1038_v43 = vpop.permute.xlu1 %1037  ;;  %v1033_v47 = vpop.permute.xlu0 %1032 }
 0x15c   : > { %v1068_v59 = vpop.permute.xlu1 %1067  ;;  %v1063_v60 = vpop.permute.xlu0 %1062 }
 0x160   : > { %v1058_v7 = vpop.permute.xlu1 %1057  ;;  %v1053_v46 = vpop.permute.xlu0 %1052 }
 0x1d4   : > { %v3941_v18 = vpop.f32.mrb[0].mxu0 }
 0x1d5   : > { %v1179_v20 = vpop.f32.mrb[1].mxu0  ;;  %v5306_v0 = vadd.f32 %v3941_v18, %v948_v9 }
 0x1d6   : > { %v5310_v3 = vadd.f32 %v1179_v20, %v943_v10 }
 0x1d8   : > { %v3944_v21 = vpop.f32.mrb[2].mxu0  ;;  %v3963_v22 = vpop.f32.mrb[0].mxu1 }
 0x1d9   : > { %v1189_v23 = vpop.f32.mrb[3].mxu0  ;;  %v1276_v55 = vpop.f32.mrb[1].mxu1  ;;  %v5302_v61 = vadd.f32 %v3963_v22, %v968_v11 }
 0x1da   : > { %v5304_v62 = vadd.f32 %v1276_v55, %v963_v12  ;;  %v5339_v18 = vadd.f32 %v1189_v23, %v5298_v15  ;;  %v1083_v15 = vpop.permute.xlu0 %1082 }
 0x1db   : > { %v1885_v5 = vadd.f32 %v5302_v61, %v5306_v0 }
 0x1dc   : > { %v3966_v25 = vpop.f32.mrb[2].mxu1  ;;  %v1878_v8 = vadd.f32 %v5304_v62, %v5310_v3 }
 0x1dd   : > { %v1286_v26 = vpop.f32.mrb[3].mxu1  ;;  %v5328_v11 = vadd.f32 %v3966_v25, %v978_v53 }
 0x1de   : > { %v5330_v12 = vadd.f32 %v1286_v26, %v973_v16 }
 0x1e4   : > { %v3985_v29 = vpop.f32.mrb[4].mxu0 }
 0x1e5   : > { %v1373_v32 = vpop.f32.mrb[5].mxu0  ;;  %v5308_v1 = vadd.f32 %v3985_v29, %v988_v13 }
 0x1e6   : > { %v5312_v4 = vadd.f32 %v1373_v32, %v983_v14 }
 0x1e7   : > { %v1886_v49 = vadd.f32 %v1885_v5, %v5308_v1 }
 0x1e8   : > { %v3988_v35 = vpop.f32.mrb[6].mxu0  ;;  %v4007_v36 = vpop.f32.mrb[4].mxu1  ;;  %v1879_v9 = vadd.f32 %v1878_v8, %v5312_v4 }
 0x1e9   : > { %v1383_v37 = vpop.f32.mrb[7].mxu0  ;;  %v1470_v38 = vpop.f32.mrb[5].mxu1  ;;  %v5316_v6 = vadd.f32 %v4007_v36, %v1008_v17  ;;  %v5336_v17 = vadd.f32 %v3944_v21, %v5296_v54  ;;  %v5344_v55 = vadd.f32 %v3988_v35, %v998_v57  ;;  %v1892_v57 = vadd.f32 %v5330_v12, %v5339_v18 }
 0x1ea   : > { %v5320_v45 = vadd.f32 %v1470_v38, %v1003_v19  ;;  %v5346_v53 = vadd.f32 %v1383_v37, %v993_v24 }
 0x1eb   : > { %v1887_v13 = vadd.f32 %v1886_v49, %v5316_v6  ;;  %6272 = vst [vmem:[#allocation21_spill] sm:$0xff] %v5344_v55  ;;  %v1899_v23 = vadd.f32 %v5328_v11, %v5336_v17 }
 0x1ec   : > { %v4010_v39 = vpop.f32.mrb[6].mxu1  ;;  %v1880_v19 = vadd.f32 %v1879_v9, %v5320_v45  ;;  %6273 = vst [vmem:[#allocation22_spill] sm:$0xff] %v5346_v53  ;;  %v1893_v36 = vadd.f32 %v1892_v57, %v5346_v53 }
 0x1ed   : > { %v1480_v40 = vpop.f32.mrb[7].mxu1  ;;  %v1900_v35 = vadd.f32 %v1899_v23, %v5344_v55 }
 0x1ee   : > { %v5361_v29 = vadd.f32 %v1480_v40, %v1013_v34 }
 0x1f0   : > { %6277 = vst [vmem:[#allocation26_spill] sm:$0xff] %v5361_v29 }
 0x1f4   : > { %v4029_v44 = vpop.f32.mrb[8].mxu0 }
 0x1f5   : > { %v1567_v48 = vpop.f32.mrb[9].mxu0  ;;  %v5323_v51 = vadd.f32 %v4029_v44, %v1028_v27  ;;  %v1088_v27 = vpop.permute.xlu1 %1087 }
 0x1f6   : > { %v5326_v10 = vadd.f32 %v1567_v48, %v1023_v28  ;;  %v5359_v28 = vadd.f32 %v4010_v39, %v1018_v33 }
 0x1f7   : > { %6268 = vst [vmem:[#allocation17_spill] sm:$0xff] %v5323_v51  ;;  %v1888_v16 = vadd.f32 %v1887_v13, %v5323_v51 }
 0x1f8   : > { %v4032_v50 = vpop.f32.mrb[10].mxu0  ;;  %v4051_v52 = vpop.f32.mrb[8].mxu1  ;;  %6269 = vst [vmem:[#allocation18_spill] sm:$0xff] %v5326_v10  ;;  %v1881_v54 = vadd.f32 %v1880_v19, %v5326_v10  ;;  %6276 = vst [vmem:[#allocation25_spill] sm:$0xff] %v5359_v28 }
 0x1f9   : > { %v1577_v56 = vpop.f32.mrb[11].mxu0  ;;  %v1664_v58 = vpop.f32.mrb[9].mxu1  ;;  %v5333_v14 = vadd.f32 %v4051_v52, %v1048_v41  ;;  %v5369_v44 = vadd.f32 %v4032_v50, %v1038_v43  ;;  %v1901_v52 = vadd.f32 %v1900_v35, %v5359_v28 }
 0x1fa   : > { %v5342_v20 = vadd.f32 %v1664_v58, %v1043_v42  ;;  %v5371_v33 = vadd.f32 %v1577_v56, %v1033_v47  ;;  %v1078_v48 = vpop.permute.xlu1 %1077  ;;  %v1894_v58 = vadd.f32 %v1893_v36, %v5361_v29  ;;  %v1073_v43 = vpop.permute.xlu0 %1072 }
 0x1fb   : > { %6270 = vst [vmem:[#allocation19_spill] sm:$0xff] %v5333_v14  ;;  %v1889_v24 = vadd.f32 %v1888_v16, %v5333_v14  ;;  %6278 = vst [vmem:[#allocation27_spill] sm:$0xff] %v5369_v44  ;;  %v1902_v8 = vadd.f32 %v1901_v52, %v5369_v44 }
 0x1fc   : > { %v4054_v63 = vpop.f32.mrb[10].mxu1  ;;  %6271 = vst [vmem:[#allocation20_spill] sm:$0xff] %v5342_v20  ;;  %v1882_v30 = vadd.f32 %v1881_v54, %v5342_v20  ;;  %6279 = vst [vmem:[#allocation28_spill] sm:$0xff] %v5371_v33  ;;  %v1895_v49 = vadd.f32 %v1894_v58, %v5371_v33 }
 0x1fd   : > { %v1674_v2 = vpop.f32.mrb[11].mxu1 }
 0x1fe   : > { %v5382_v50 = vadd.f32 %v1674_v2, %v1053_v46  ;;  %v1098_v57 = vpop.permute.xlu1 %1097 }
 0x200   : > { %6281 = vst [vmem:[#allocation30_spill] sm:$0xff] %v5382_v50 }
 0x204   : > { %v4073_v22 = vpop.f32.mrb[12].mxu0 }
 0x205   : > { %v5349_v25 = vadd.f32 %v4073_v22, %v1068_v59  ;;  %v1761_v26 = vpop.f32.mrb[13].mxu0  ;;  %v5379_v59 = vadd.f32 %v4054_v63, %v1058_v7  ;;  %v1896_v22 = vadd.f32 %v1895_v49, %v5382_v50 }
 0x206   : > { %v5352_v21 = vadd.f32 %v1761_v26, %v1063_v60 }
 0x207   : > { %6274 = vst [vmem:[#allocation23_spill] sm:$0xff] %v5349_v25  ;;  %v1890_v37 = vadd.f32 %v1889_v24, %v5349_v25  ;;  %6280 = vst [vmem:[#allocation29_spill] sm:$0xff] %v5379_v59  ;;  %v1903_v2 = vadd.f32 %v1902_v8, %v5379_v59  ;;  %v1093_v24 = vpop.permute.xlu0 %1092 }
 0x208   : > { %6275 = vst [vmem:[#allocation24_spill] sm:$0xff] %v5352_v21  ;;  %v4076_v31 = vpop.f32.mrb[14].mxu0  ;;  %v4095_v32 = vpop.f32.mrb[12].mxu1  ;;  %v1883_v34 = vadd.f32 %v1882_v30, %v5352_v21 }
 0x209   : > { %v5367_v38 = vadd.f32 %v4095_v32, %v1088_v27  ;;  %v1771_v41 = vpop.f32.mrb[15].mxu0  ;;  %v1858_v42 = vpop.f32.mrb[13].mxu1  ;;  %v5386_v9 = vadd.f32 %v4076_v31, %v1078_v48 }
 0x20a   : > { %v5374_v39 = vadd.f32 %v1858_v42, %v1083_v15  ;;  %v5412_v23 = vadd.f32 %v1771_v41, %v1073_v43 }
 0x20b   : > { %v1891_v40 = vadd.f32 %v1890_v37, %v5367_v38  ;;  %6282 = vst [vmem:[#allocation31_spill] sm:$0xff] %v5386_v9  ;;  %v1904_v27 = vadd.f32 %v1903_v2, %v5386_v9 }
 0x20c   : > { %v1884_v60 = vadd.f32 %v1883_v34, %v5374_v39  ;;  %v4098_v5 = vpop.f32.mrb[14].mxu1  ;;  %6283 = vst [vmem:[#allocation32_spill] sm:$0xff] %v5412_v23  ;;  %v1897_v43 = vadd.f32 %v1896_v22, %v5412_v23 }
 0x20d   : > { %v1908_v47 = vmul.f32 0.125, %v1891_v40  ;;  %v1868_v56 = vpop.f32.mrb[15].mxu1  ;;  %v5428_v41 = vadd.f32 %v4098_v5, %v1098_v57 }
 0x20e   : > { %v1907_v19 = vmul.f32 0.125, %v1884_v60  ;;  %v5430_v42 = vadd.f32 %v1868_v56, %v1093_v24 }
 0x20f   : > { %v5389_v13 = vsub.f32 %v5306_v0, %v1908_v47  ;;  %v5392_v63 = vsub.f32 %v5302_v61, %v1908_v47  ;;  %v5395_v7 = vsub.f32 %v5308_v1, %v1908_v47  ;;  %v5399_v46 = vsub.f32 %v5316_v6, %v1908_v47 }
 0x210   : > { %v5408_v54 = vsub.f32 %v5323_v51, %v1908_v47  ;;  %v5415_v31 = vsub.f32 %v5310_v3, %v1907_v19  ;;  %v5418_v32 = vsub.f32 %v5304_v62, %v1907_v19  ;;  %v5421_v35 = vsub.f32 %v5312_v4, %v1907_v19  ;;  %6284 = vst [vmem:[#allocation33_spill] sm:$0xff] %v5430_v42 }
 0x211   : > { %v1944_v16 = vmul.f32 %v5389_v13, %v5389_v13  ;;  %v1948_v26 = vmul.f32 %v5392_v63, %v5392_v63  ;;  %v1952_v15 = vmul.f32 %v5395_v7, %v5395_v7  ;;  %v5424_v36 = vsub.f32 %v5333_v14, %v1908_v47 }
 0x212   : > { %v1956_v37 = vmul.f32 %v5399_v46, %v5399_v46  ;;  %v5433_v40 = vsub.f32 %v5320_v45, %v1907_v19  ;;  %v1943_v48 = vmul.f32 %v5415_v31, %v5415_v31  ;;  %v1947_v52 = vmul.f32 %v5418_v32, %v5418_v32 }
 0x213   : > { %v1982_v30 = vadd.f32 %v1948_v26, %v1944_v16  ;;  %v5440_v58 = vsub.f32 %v5349_v25, %v1908_v47  ;;  %v5443_v60 = vsub.f32 %v5367_v38, %v1908_v47  ;;  %v1960_v5 = vmul.f32 %v5408_v54, %v5408_v54 }
 0x214   : > { %v5449_v8 = vsub.f32 %v5326_v10, %v1907_v19  ;;  %v1951_v49 = vmul.f32 %v5421_v35, %v5421_v35  ;;  %v1975_v2 = vadd.f32 %v1947_v52, %v1943_v48  ;;  %v1964_v16 = vmul.f32 %v5424_v36, %v5424_v36 }
 0x215   : > { %v1983_v34 = vadd.f32 %v1982_v30, %v1952_v15  ;;  %v5456_v26 = vsub.f32 %v5342_v20, %v1907_v19  ;;  %v1905_v47 = vadd.f32 %v1904_v27, %v5428_v41  ;;  %v1955_v22 = vmul.f32 %v5433_v40, %v5433_v40 }
 0x216   : > { %v1976_v57 = vadd.f32 %v1975_v2, %v1951_v49  ;;  %v1898_v24 = vadd.f32 %v1897_v43, %v5430_v42  ;;  %v1968_v30 = vmul.f32 %v5440_v58, %v5440_v58  ;;  %v5467_v52 = vsub.f32 %v5352_v21, %v1907_v19 }
 0x217   : > { %v1984_v56 = vadd.f32 %v1983_v34, %v1956_v37  ;;  %v1972_v37 = vmul.f32 %v5443_v60, %v5443_v60  ;;  %v1910_v34 = vmul.f32 0.125, %v1905_v47  ;;  %v1959_v27 = vmul.f32 %v5449_v8, %v5449_v8 }
 0x218   : > { %v1963_v47 = vmul.f32 %v5456_v26, %v5456_v26  ;;  %v1909_v25 = vmul.f32 0.125, %v1898_v24  ;;  %v1967_v14 = vmul.f32 %v5467_v52, %v5467_v52 }
 0x219   : > { %v1985_v15 = vadd.f32 %v1984_v56, %v1960_v5  ;;  %v1977_v5 = vadd.f32 %v1976_v57, %v1955_v22  ;;  %v5472_v56 = vsub.f32 %v5374_v39, %v1907_v19  ;;  %v5475_v43 = vsub.f32 %v5336_v17, %v1910_v34 }
 0x21a   : > { %v5478_v49 = vsub.f32 %v5328_v11, %v1910_v34  ;;  %v5481_v2 = vsub.f32 %v5344_v55, %v1910_v34  ;;  %v5486_v22 = vsub.f32 %v5359_v28, %v1910_v34  ;;  %v5502_v28 = vsub.f32 %v5339_v18, %v1909_v25 }
 0x21b   : > { %v1986_v48 = vadd.f32 %v1985_v15, %v1964_v16  ;;  %v1978_v15 = vadd.f32 %v1977_v5, %v1959_v27  ;;  %v1946_v19 = vmul.f32 %v5475_v43, %v5475_v43  ;;  %v5513_v10 = vsub.f32 %v5346_v53, %v1909_v25 }
 0x21c   : > { %v1950_v57 = vmul.f32 %v5478_v49, %v5478_v49  ;;  %v1954_v24 = vmul.f32 %v5481_v2, %v5481_v2 }
 0x21d   : > { %v1987_v16 = vadd.f32 %v1986_v48, %v1968_v30  ;;  %v1979_v20 = vadd.f32 %v1978_v15, %v1963_v47  ;;  %v1971_v30 = vmul.f32 %v5472_v56, %v5472_v56  ;;  %v5497_v48 = vsub.f32 %v5369_v44, %v1910_v34 }
 0x21e   : > { %v1996_v51 = vadd.f32 %v1950_v57, %v1946_v19  ;;  %v5510_v47 = vsub.f32 %v5330_v12, %v1909_v25  ;;  %v1953_v53 = vmul.f32 %v5513_v10, %v5513_v10 }
 0x21f   : > { %v1988_v21 = vadd.f32 %v1987_v16, %v1972_v37  ;;  %v1980_v5 = vadd.f32 %v1979_v20, %v1967_v14  ;;  %v5505_v37 = vsub.f32 %v5379_v59, %v1910_v34  ;;  %v1958_v16 = vmul.f32 %v5486_v22, %v5486_v22 }
 0x220   : > { %v1997_v55 = vadd.f32 %v1996_v51, %v1954_v24  ;;  %v5516_v14 = vsub.f32 %v5386_v9, %v1910_v34  ;;  %v1962_v20 = vmul.f32 %v5497_v48, %v5497_v48  ;;  %v1949_v19 = vmul.f32 %v5510_v47, %v5510_v47 }
 0x221   : > { %v2004_v27 = vmul.f32 0.14285715, %v1988_v21  ;;  %v1981_v44 = vadd.f32 %v1980_v5, %v1971_v30  ;;  %v1945_v21 = vmul.f32 %v5502_v28, %v5502_v28  ;;  %v5525_v51 = vsub.f32 %v5361_v29, %v1909_v25 }
 0x222   : > { %v5528_v30 = vsub.f32 %v5428_v41, %v1910_v34  ;;  %v1966_v24 = vmul.f32 %v5505_v37, %v5505_v37  ;;  %v5533_v5 = vsub.f32 %v5371_v33, %v1909_v25 }
 0x223   : > { %v2008_v15 = vadd.f32 1e-09, %v2004_v27  ;;  %v2003_v57 = vmul.f32 0.14285715, %v1981_v44  ;;  %v1998_v27 = vadd.f32 %v1997_v55, %v1958_v16  ;;  %v1970_v55 = vmul.f32 %v5516_v14, %v5516_v14 }
 0x224   : > { %v5540_v44 = vsub.f32 %v5382_v50, %v1909_v25  ;;  %v1957_v16 = vmul.f32 %v5525_v51, %v5525_v51  ;;  %v5552_v50 = vsub.f32 %v5430_v42, %v1909_v25 }
 0x225   : > { %4453 = vrsqrt.f32 %v2008_v15  ;;  %v2007_v9 = vadd.f32 1e-09, %v2003_v57  ;;  %v1999_v59 = vadd.f32 %v1998_v27, %v1962_v20  ;;  %v1989_v15 = vadd.f32 %v1949_v19, %v1945_v21 }
 0x226   : > { %v1974_v57 = vmul.f32 %v5528_v30, %v5528_v30  ;;  %v5547_v27 = vsub.f32 %v5412_v23, %v1909_v25  ;;  %v1961_v21 = vmul.f32 %v5533_v5, %v5533_v5 }
 0x227   : > { %4455 = vrsqrt.f32 %v2007_v9  ;;  %v2000_v34 = vadd.f32 %v1999_v59, %v1966_v24  ;;  %v1990_v29 = vadd.f32 %v1989_v15, %v1953_v53  ;;  %v1965_v59 = vmul.f32 %v5540_v44, %v5540_v44 }
 0x228   : > { %v1969_v15 = vmul.f32 %v5547_v27, %v5547_v27 }
 0x229   : > { %v2001_v20 = vadd.f32 %v2000_v34, %v1970_v55  ;;  %v1991_v19 = vadd.f32 %v1990_v29, %v1957_v16 }
 0x22b   : > { %v2002_v33 = vadd.f32 %v2001_v20, %v1974_v57  ;;  %v1992_v9 = vadd.f32 %v1991_v19, %v1961_v21  ;;  %v1973_v20 = vmul.f32 %v5552_v50, %v5552_v50 }
 0x22d   : > { %v2006_v24 = vmul.f32 0.14285715, %v2002_v33  ;;  %v1993_v55 = vadd.f32 %v1992_v9, %v1965_v59 }
 0x22f   : > { %v4454_v53 = vpop.eup %4453  ;;  %v2010_v57 = vadd.f32 1e-09, %v2006_v24  ;;  %v1994_v21 = vadd.f32 %v1993_v55, %v1969_v15 }
 0x230   : > { %v2044_v34 = vmul.f32 %v4454_v53, %v5443_v60  ;;  %v2016_v29 = vmul.f32 %v4454_v53, %v5389_v13  ;;  %v2020_v16 = vmul.f32 %v4454_v53, %v5392_v63  ;;  %v2024_v25 = vmul.f32 %v4454_v53, %v5395_v7 }
 0x231   : > { %v4456_v42 = vpop.eup %4455  ;;  %4457 = vrsqrt.f32 %v2010_v57  ;;  %v1995_v59 = vadd.f32 %v1994_v21, %v1973_v20  ;;  %v5578_v21 = vstv %s2175_s20 }
 0x232   : > { %v2076_v33 = vmul.f32 0.5, %v2044_v34  ;;  %v2048_v19 = vmul.f32 0.5, %v2016_v29  ;;  %v2052_v23 = vmul.f32 0.5, %v2020_v16  ;;  %v2056_v9 = vmul.f32 0.5, %v2024_v25 }
 0x233   : > { %v2043_v13 = vmul.f32 %v4456_v42, %v5472_v56  ;;  %v2015_v63 = vmul.f32 %v4456_v42, %v5415_v31  ;;  %v2019_v7 = vmul.f32 %v4456_v42, %v5418_v32  ;;  %v2005_v60 = vmul.f32 0.14285715, %v1995_v59 }
 0x234   : > { %4459 = vtanh.f32 %v2076_v33  ;;  %v2023_v24 = vmul.f32 %v4456_v42, %v5421_v35  ;;  %v2027_v34 = vmul.f32 %v4456_v42, %v5433_v40  ;;  %v2028_v25 = vmul.f32 %v4454_v53, %v5399_v46 }
 0x235   : > { %4461 = vtanh.f32 %v2048_v19  ;;  %v2075_v15 = vmul.f32 0.5, %v2043_v13  ;;  %v2047_v55 = vmul.f32 0.5, %v2015_v63  ;;  %v2009_v29 = vadd.f32 1e-09, %v2005_v60 }
 0x236   : > { %4463 = vtanh.f32 %v2052_v23  ;;  %v2051_v16 = vmul.f32 0.5, %v2019_v7  ;;  %v2055_v31 = vmul.f32 0.5, %v2023_v24  ;;  %v2032_v32 = vmul.f32 %v4454_v53, %v5408_v54 }
 0x237   : > { %4465 = vtanh.f32 %v2056_v9  ;;  %v2031_v56 = vmul.f32 %v4456_v42, %v5449_v8  ;;  %v2035_v35 = vmul.f32 %v4456_v42, %v5456_v26  ;;  %v2036_v23 = vmul.f32 %v4454_v53, %v5424_v36 }
 0x238   : > { %4467 = vtanh.f32 %v2075_v15  ;;  %v2059_v40 = vmul.f32 0.5, %v2027_v34  ;;  %v2060_v57 = vmul.f32 0.5, %v2028_v25  ;;  %v2039_v20 = vmul.f32 %v4456_v42, %v5467_v52 }
 0x239   : > { %4469 = vrsqrt.f32 %v2009_v29  ;;  %v5581_v46 = vstv %s5558_s30  ;;  %v5583_v33 = vmul.f32 0.5, %v2032_v32  ;;  %v5586_v54 = vmul.f32 %v4454_v53, %v5440_v58 }
 0x23a   : > { %4471 = vtanh.f32 %v2047_v55  ;;  %v2063_v26 = vmul.f32 0.5, %v2031_v56  ;;  %v5590_v36 = vmul.f32 0.5, %v2035_v35  ;;  %v5592_v19 = vmul.f32 0.5, %v2036_v23 }
 0x23b   : > { %4473 = vtanh.f32 %v2051_v16  ;;  %v5588_v8 = vpop.eup %4457  ;;  %v5602_v63 = vmul.f32 0.5, %v2039_v20 }
 0x23c   : > { %4475 = vtanh.f32 %v2055_v31  ;;  %v2046_v42 = vmul.f32 %v5588_v8, %v5528_v30  ;;  %v2018_v52 = vmul.f32 %v5588_v8, %v5475_v43  ;;  %v2022_v9 = vmul.f32 %v5588_v8, %v5478_v49 }
 0x23d   : > { %4477 = vtanh.f32 %v2059_v40  ;;  %v2026_v13 = vmul.f32 %v5588_v8, %v5481_v2  ;;  %v5606_v30 = vmul.f32 %v5588_v8, %v5486_v22 }
 0x23e   : > { %v4460_v59 = vpop.eup %4459  ;;  %4479 = vtanh.f32 %v2060_v57  ;;  %v2078_v60 = vmul.f32 0.5, %v2046_v42  ;;  %v2050_v15 = vmul.f32 0.5, %v2018_v52  ;;  %v2054_v34 = vmul.f32 0.5, %v2022_v9 }
 0x23f   : > { %v4462_v58 = vpop.eup %4461  ;;  %v2140_v53 = vadd.f32 1.0, %v4460_v59  ;;  %4481 = vtanh.f32 %v2063_v26  ;;  %v5608_v2 = vmul.f32 0.5, %v2026_v13 }
 0x240   : > { %v4464_v7 = vpop.eup %4463  ;;  %v2112_v24 = vadd.f32 1.0, %v4462_v58  ;;  %4483 = vtanh.f32 %v2078_v60 }
 0x241   : > { %v4466_v43 = vpop.eup %4465  ;;  %v2172_v55 = vmul.f32 0.5, %v2140_v53  ;;  %v2116_v49 = vadd.f32 1.0, %v4464_v7  ;;  %4485 = vtanh.f32 %v2050_v15 }
 0x242   : > { %v4468_v29 = vpop.eup %4467  ;;  %v2144_v16 = vmul.f32 0.5, %v2112_v24  ;;  %v2120_v25 = vadd.f32 1.0, %v4466_v43 }
 0x243   : > { %v5610_v31 = vpop.eup %4469  ;;  %v2206_v32 = vmul.f32 %v5578_v21, %v2172_v55  ;;  %v2139_v56 = vadd.f32 1.0, %v4468_v29  ;;  %v2148_v35 = vmul.f32 0.5, %v2116_v49 }
 0x244   : > { %v4472_v22 = vpop.eup %4471  ;;  %v2045_v23 = vmul.f32 %v5610_v31, %v5552_v50  ;;  %v2178_v40 = vmul.f32 %v5578_v21, %v2144_v16  ;;  %v2017_v57 = vmul.f32 %v5610_v31, %v5502_v28  ;;  %v2021_v20 = vmul.f32 %v5610_v31, %v5510_v47 }
 0x245   : > { %v4474_v26 = vpop.eup %4473  ;;  %v2239_v59 = vadd.f32 %v5581_v46, %v2206_v32  ;;  %v2171_v42 = vmul.f32 0.5, %v2139_v56  ;;  %v2111_v52 = vadd.f32 1.0, %v4472_v22  ;;  %v2182_v9 = vmul.f32 %v5578_v21, %v2148_v35 }
 0x246   : > { %v2077_v58 = vmul.f32 0.5, %v2045_v23  ;;  %v2211_v53 = vadd.f32 %v5581_v46, %v2178_v40  ;;  %v2115_v13 = vadd.f32 1.0, %v4474_v26  ;;  %v2049_v50 = vmul.f32 0.5, %v2017_v57  ;;  %v4476_v7 = vpop.eup %4475 }
 0x247   : > { %v5624_v60 = vmul.f32 %v2239_v59, %v5367_v38  ;;  %v2205_v28 = vmul.f32 %v5578_v21, %v2171_v42  ;;  %v2143_v24 = vmul.f32 0.5, %v2111_v52  ;;  %v2215_v47 = vadd.f32 %v5581_v46, %v2182_v9  ;;  %v4478_v15 = vpop.eup %4477 }
 0x248   : > { %4487 = vtanh.f32 %v2077_v58  ;;  %v2243_v43 = vmul.f32 %v2211_v53, %v5306_v0  ;;  %v2147_v55 = vmul.f32 0.5, %v2115_v13  ;;  %v2053_v49 = vmul.f32 0.5, %v2021_v20  ;;  %v4480_v29 = vpop.eup %4479 }
 0x249   : > { %v2238_v16 = vadd.f32 %v5581_v46, %v2205_v28  ;;  %v2177_v32 = vmul.f32 %v5578_v21, %v2143_v24  ;;  %v2247_v56 = vmul.f32 %v2215_v47, %v5302_v61  ;;  %4489 = vtanh.f32 %v2049_v50  ;;  %v5633_v23 = vpop.eup %4481 }
 0x24a   : > { %v2181_v38 = vmul.f32 %v5578_v21, %v2147_v55  ;;  %4491 = vtanh.f32 %v2053_v49  ;;  %v2119_v35 = vadd.f32 1.0, %v4476_v7  ;;  %v2152_v22 = vmul.f32 0.5, %v2120_v25  ;;  %v4484_v20 = vpop.eup %4483 }
 0x24b   : > { %v5636_v40 = vmul.f32 %v2238_v16, %v5374_v39  ;;  %v2210_v0 = vadd.f32 %v5581_v46, %v2177_v32  ;;  %4493 = vtanh.f32 %v2054_v34  ;;  %v2123_v57 = vadd.f32 1.0, %v4478_v15  ;;  %v4486_v52 = vpop.eup %4485 }
 0x24c   : > { %v2214_v26 = vadd.f32 %v5581_v46, %v2181_v38  ;;  %v2151_v59 = vmul.f32 0.5, %v2119_v35  ;;  %v2186_v61 = vmul.f32 %v5578_v21, %v2152_v22  ;;  %v2124_v42 = vadd.f32 1.0, %v4480_v29 }
 0x24d   : > { %v2142_v9 = vadd.f32 1.0, %v4484_v20  ;;  %v2242_v25 = vmul.f32 %v2210_v0, %v5310_v3  ;;  %v2155_v58 = vmul.f32 0.5, %v2123_v57  ;;  %v2025_v39 = vmul.f32 %v5610_v31, %v5513_v10 }
 0x24e   : > { %v2246_v53 = vmul.f32 %v2214_v26, %v5304_v62  ;;  %v2114_v13 = vadd.f32 1.0, %v4486_v52  ;;  %v2185_v34 = vmul.f32 %v5578_v21, %v2151_v59  ;;  %v2219_v50 = vadd.f32 %v5581_v46, %v2186_v61 }
 0x24f   : > { %v2174_v7 = vmul.f32 0.5, %v2142_v9  ;;  %v4315_v28 = vpack.c.bf16 %v2243_v43, %v2242_v25  ;;  %v2156_v24 = vmul.f32 0.5, %v2124_v42  ;;  %v2189_v47 = vmul.f32 %v5578_v21, %v2155_v58 }
 0x250   : > { %v4323_v15 = vpack.c.bf16 %v2247_v56, %v2246_v53  ;;  %v2146_v55 = vmul.f32 0.5, %v2114_v13  ;;  %v2218_v3 = vadd.f32 %v5581_v46, %v2185_v34  ;;  %v2251_v49 = vmul.f32 %v2219_v50, %v5308_v1 }
 0x251   : > { %v2208_v10 = vmul.f32 %v5578_v21, %v2174_v7  ;;  %4316 = vmatprep.subr.bf16.mxu0 %v4315_v28  ;;  %v2190_v62 = vmul.f32 %v5578_v21, %v2156_v24  ;;  %v2222_v29 = vadd.f32 %v5581_v46, %v2189_v47  ;;  %v2057_v16 = vmul.f32 0.5, %v2025_v39 }
 0x252   : > { %v4488_v32 = vpop.eup %4487  ;;  %4324 = vmatprep.subr.bf16.mxu1 %v4323_v15  ;;  %4318 = vmatpush3.bf16.msra.mxu0 %v4315_v28  ;;  %v2180_v43 = vmul.f32 %v5578_v21, %v2146_v55  ;;  %v2250_v56 = vmul.f32 %v2218_v3, %v5312_v4  ;;  %4495 = vtanh.f32 %v5608_v2  ;;  %v2029_v1 = vmul.f32 %v5610_v31, %v5525_v51 }
 0x253   : > { %v4490_v38 = vpop.eup %4489  ;;  %v2241_v35 = vadd.f32 %v5581_v46, %v2208_v10  ;;  %4326 = vmatpush3.bf16.msra.mxu1 %v4323_v15  ;;  %v2223_v22 = vadd.f32 %v5581_v46, %v2190_v62  ;;  %v2254_v0 = vmul.f32 %v2222_v29, %v5320_v45  ;;  %v2062_v57 = vmul.f32 0.5, %v5606_v30 }
 0x254   : > { %v4492_v20 = vpop.eup %4491  ;;  %v2113_v26 = vadd.f32 1.0, %v4490_v38  ;;  %v5662_v59 = vpack.c.bf16 %v2251_v49, %v2250_v56  ;;  %4497 = vtanh.f32 %v2057_v16  ;;  %v5665_v4 = vmul.f32 0.5, %v5586_v54  ;;  %v6285_v56 = vld [vmem:[#allocation18_spill] sm:$0xff]  ;;  %v2275_v38 = vld [vmem:[#allocation9 + $0x8] sm:$0xff] }
 0x255   : > { %v4494_v2 = vpop.eup %4493  ;;  %v5668_v51 = vmul.f32 %v2241_v35, %v5428_v41  ;;  %v2213_v61 = vadd.f32 %v5581_v46, %v2180_v43  ;;  %v2117_v42 = vadd.f32 1.0, %v4492_v20  ;;  %v2255_v52 = vmul.f32 %v2223_v22, %v5316_v6  ;;  %v2278_v20 = vld [vmem:[#allocation9 + $0x20] sm:$0xff] }
 0x256   : > { %v2145_v45 = vmul.f32 0.5, %v2113_v26  ;;  %v2118_v9 = vadd.f32 1.0, %v4494_v2  ;;  %v2061_v30 = vmul.f32 0.5, %v2029_v1  ;;  %v2034_v25 = vmul.f32 %v5588_v8, %v5497_v48  ;;  %v2277_v26 = vld [vmem:[#allocation9 + $0x18] sm:$0xff] }
 0x257   : > { %v2141_v58 = vadd.f32 1.0, %v4488_v32  ;;  %v2149_v39 = vmul.f32 0.5, %v2117_v42  ;;  %v5674_v53 = vpack.c.bf16 %v2255_v52, %v2254_v0  ;;  %4499 = vtanh.f32 %v2062_v57 }
 0x258   : > { %v2179_v54 = vmul.f32 %v5578_v21, %v2145_v45  ;;  %v2150_v41 = vmul.f32 0.5, %v2118_v9  ;;  %4501 = vtanh.f32 %v2061_v30  ;;  %v2127_v13 = vadd.f32 1.0, %v5633_v23  ;;  %v6286_v30 = vld [vmem:[#allocation21_spill] sm:$0xff] }
 0x259   : > { %v2245_v34 = vmul.f32 %v2213_v61, %v5336_v17  ;;  %v2183_v6 = vmul.f32 %v5578_v21, %v2149_v39  ;;  %4503 = vtanh.f32 %v5583_v33  ;;  %v2033_v48 = vmul.f32 %v5610_v31, %v5533_v5 }
 0x25a   : > { %v2212_v50 = vadd.f32 %v5581_v46, %v2179_v54  ;;  %v2184_v7 = vmul.f32 %v5578_v21, %v2150_v41  ;;  %v2159_v28 = vmul.f32 0.5, %v2127_v13  ;;  %4505 = vtanh.f32 %v5590_v36 }
 0x25b   : > { %v5686_v24 = vmul.f32 0.5, %v2141_v58  ;;  %v2216_v23 = vadd.f32 %v5581_v46, %v2183_v6  ;;  %4507 = vtanh.f32 %v5592_v19  ;;  %v2065_v17 = vmul.f32 0.5, %v2033_v48  ;;  %v6287_v6 = vld [vmem:[#allocation22_spill] sm:$0xff] }
 0x25c   : > { %v4496_v47 = vpop.eup %4495  ;;  %v2244_v33 = vmul.f32 %v2212_v50, %v5339_v18  ;;  %v2217_v15 = vadd.f32 %v5581_v46, %v2184_v7  ;;  %v2193_v5 = vmul.f32 %v5578_v21, %v2159_v28  ;;  %v2066_v55 = vmul.f32 0.5, %v2034_v25 }
 0x25d   : > { %v2248_v3 = vmul.f32 %v2216_v23, %v5330_v12  ;;  %v2122_v49 = vadd.f32 1.0, %v4496_v47  ;;  %4509 = vtanh.f32 %v2065_v17  ;;  %v2037_v36 = vmul.f32 %v5610_v31, %v5540_v44 }
 0x25e   : > { %v4498_v10 = vpop.eup %4497  ;;  %v4319_v62 = vpack.c.bf16 %v2245_v34, %v2244_v33  ;;  %v2249_v19 = vmul.f32 %v2217_v15, %v5328_v11  ;;  %v2226_v29 = vadd.f32 %v5581_v46, %v2193_v5  ;;  %4511 = vtanh.f32 %v2066_v55 }
 0x25f   : > { %v2121_v18 = vadd.f32 1.0, %v4498_v10  ;;  %v2154_v16 = vmul.f32 0.5, %v2122_v49  ;;  %v2038_v32 = vmul.f32 %v5588_v8, %v5505_v37  ;;  %v2069_v43 = vmul.f32 0.5, %v2037_v36 }
 0x260   : > { %4320 = vmatprep.subr.bf16.mxu0 %v4319_v62  ;;  %v4327_v12 = vpack.c.bf16 %v2249_v19, %v2248_v3  ;;  %v5701_v1 = vmul.f32 %v2226_v29, %v6285_v56  ;;  %4513 = vtanh.f32 %v5602_v63  ;;  %v5706_v44 = vpack.c.bf16 %v5624_v60, %v5636_v40  ;;  %v6288_v3 = vld [vmem:[#allocation25_spill] sm:$0xff]  ;;  %v6289_v29 = vld [vmem:[#allocation26_spill] sm:$0xff] }
 0x261   : > { %v4500_v11 = vpop.eup %4499  ;;  %4322 = vmatpush3.bf16.msra.mxu0 %v4319_v62  ;;  %v2153_v35 = vmul.f32 0.5, %v2121_v18  ;;  %v2188_v22 = vmul.f32 %v5578_v21, %v2154_v16  ;;  %v2070_v0 = vmul.f32 0.5, %v2038_v32  ;;  %4515 = vtanh.f32 %v2069_v43  ;;  %v6290_v56 = vld [vmem:[#allocation17_spill] sm:$0xff] }
 0x262   : > { %v4502_v37 = vpop.eup %4501  ;;  %4328 = vmatprep.subr.bf16.mxu1 %v4327_v12  ;;  %4332 = vmatprep.subr.bf16.mxu0 %v5662_v59  ;;  %v2126_v57 = vadd.f32 1.0, %v4500_v11  ;;  %4517 = vtanh.f32 %v5665_v4  ;;  %v2041_v63 = vmul.f32 %v5610_v31, %v5547_v27  ;;  %v2042_v60 = vmul.f32 %v5588_v8, %v5516_v14  ;;  %v2280_v27 = vld [vmem:[#allocation9 + $0x30] sm:$0xff] }
 0x263   : > { %v4504_v40 = vpop.eup %4503  ;;  %4330 = vmatpush3.bf16.msra.mxu1 %v4327_v12  ;;  %v2187_v2 = vmul.f32 %v5578_v21, %v2153_v35  ;;  %v2221_v61 = vadd.f32 %v5581_v46, %v2188_v22  ;;  %v2125_v42 = vadd.f32 1.0, %v4502_v37  ;;  %4519 = vtanh.f32 %v2070_v0  ;;  %v2279_v35 = vld [vmem:[#allocation9 + $0x28] sm:$0xff] }
 0x264   : > { %v4506_v52 = vpop.eup %4505  ;;  %4340 = vmatprep.subr.bf16.mxu1 %v5674_v53  ;;  %4108 = vmatmul.mubr.msk.f32.vlgmr.msra.gmra.mrb[16].mxu0 %vm2302_vm1, %v2275_v38  ;;  %v2158_v4 = vmul.f32 0.5, %v2126_v57  ;;  %v2128_v45 = vadd.f32 1.0, %v4504_v40  ;;  %v2073_v31 = vmul.f32 0.5, %v2041_v63  ;;  %v2074_v9 = vmul.f32 0.5, %v2042_v60 }
 0x265   : > { %v4508_v14 = vpop.eup %4507  ;;  %4334 = vmatpush3.bf16.msra.mxu0 %v5662_v59  ;;  %v2220_v8 = vadd.f32 %v5581_v46, %v2187_v2  ;;  %v2253_v25 = vmul.f32 %v2221_v61, %v6286_v30  ;;  %v2157_v58 = vmul.f32 0.5, %v2125_v42  ;;  %v2131_v39 = vadd.f32 1.0, %v4506_v52  ;;  %4129 = vmatprep.mubr.msk.f32.mxu0 %vm2302_vm1, %v2278_v20  ;;  %v6291_v20 = vld [vmem:[#allocation20_spill] sm:$0xff]  ;;  %v6292_v2 = vld [vmem:[#allocation19_spill] sm:$0xff] }
 0x266   : > { %4119 = vmatmul.mubr.msk.f32.vlgmr.msra.gmra.mrb[16].mxu1 %vm2302_vm1, %v2277_v26  ;;  %v2192_v54 = vmul.f32 %v5578_v21, %v2158_v4  ;;  %v2160_v41 = vmul.f32 0.5, %v2128_v45  ;;  %v2132_v13 = vadd.f32 1.0, %v4508_v14  ;;  %4521 = vtanh.f32 %v2073_v31  ;;  %v2281_v30 = vld [vmem:[#allocation9 + $0x38] sm:$0xff] }
 0x267   : > { %v4510_v34 = vpop.eup %4509  ;;  %4342 = vmatpush3.bf16.msra.mxu1 %v5674_v53  ;;  %v2252_v59 = vmul.f32 %v2220_v8, %v6287_v6  ;;  %v2191_v48 = vmul.f32 %v5578_v21, %v2157_v58  ;;  %v2163_v50 = vmul.f32 0.5, %v2131_v39  ;;  %4140 = vmatprep.mubr.msk.f32.mxu1 %vm2302_vm1, %v2280_v27  ;;  %4523 = vtanh.f32 %v2074_v9  ;;  %v2282_v9 = vld [vmem:[#allocation9 + $0x40] sm:$0xff] }
 0x268   : > { %v4512_v7 = vpop.eup %4511  ;;  %v2225_v28 = vadd.f32 %v5581_v46, %v2192_v54  ;;  %v2194_v23 = vmul.f32 %v5578_v21, %v2160_v41  ;;  %v2164_v17 = vmul.f32 0.5, %v2132_v13  ;;  %v2129_v47 = vadd.f32 1.0, %v4510_v34  ;;  %v6294_v54 = vld [vmem:[#allocation27_spill] sm:$0xff] }
 0x269   : > { %v4335_v33 = vpack.c.bf16 %v2253_v25, %v2252_v59  ;;  %v2224_v15 = vadd.f32 %v5581_v46, %v2191_v48  ;;  %v2197_v53 = vmul.f32 %v5578_v21, %v2163_v50  ;;  %v2130_v5 = vadd.f32 1.0, %v4512_v7  ;;  %v2284_v59 = vld [vmem:[#allocation9 + $0x50] sm:$0xff] }
 0x26a   : > { %v4514_v55 = vpop.eup %4513  ;;  %v2257_v49 = vmul.f32 %v2225_v28, %v6288_v3  ;;  %v2227_v36 = vadd.f32 %v5581_v46, %v2194_v23  ;;  %v2198_v10 = vmul.f32 %v5578_v21, %v2164_v17  ;;  %v2161_v62 = vmul.f32 0.5, %v2129_v47  ;;  %v6296_v3 = vld [vmem:[#allocation24_spill] sm:$0xff] }
 0x26b   : > { %v4516_v19 = vpop.eup %4515  ;;  %4336 = vmatprep.subr.bf16.mxu0 %v4335_v33  ;;  %v2256_v18 = vmul.f32 %v2224_v15, %v6289_v29  ;;  %v2230_v16 = vadd.f32 %v5581_v46, %v2197_v53  ;;  %v2162_v32 = vmul.f32 0.5, %v2130_v5  ;;  %v2135_v43 = vadd.f32 1.0, %v4514_v55  ;;  %v6295_v5 = vld [vmem:[#allocation30_spill] sm:$0xff] }
 0x26c   : > { %v4518_v12 = vpop.eup %4517  ;;  %4338 = vmatpush3.bf16.msra.mxu0 %v4335_v33  ;;  %v2259_v11 = vmul.f32 %v2227_v36, %v6290_v56  ;;  %v2231_v38 = vadd.f32 %v5581_v46, %v2198_v10  ;;  %v2195_v22 = vmul.f32 %v5578_v21, %v2161_v62  ;;  %v2133_v0 = vadd.f32 1.0, %v4516_v19  ;;  %v6297_v36 = vld [vmem:[#allocation23_spill] sm:$0xff]  ;;  %v6298_v19 = vld [vmem:[#allocation29_spill] sm:$0xff] }
 0x26d   : > { %v4520_v37 = vpop.eup %4519  ;;  %v4343_v57 = vpack.c.bf16 %v2257_v49, %v2256_v18  ;;  %v2262_v63 = vmul.f32 %v2230_v16, %v6291_v20  ;;  %v2196_v60 = vmul.f32 %v5578_v21, %v2162_v32  ;;  %v2136_v40 = vadd.f32 1.0, %v4518_v12  ;;  %v2283_v18 = vld [vmem:[#allocation9 + $0x48] sm:$0xff] }
 0x26e   : > { %v4347_v26 = vpack.c.bf16 %v2259_v11, %v5701_v1  ;;  %v2263_v61 = vmul.f32 %v2231_v38, %v6292_v2  ;;  %v2228_v42 = vadd.f32 %v5581_v46, %v2195_v22  ;;  %v2134_v52 = vadd.f32 1.0, %v4520_v37  ;;  %v6293_v1 = vld [vmem:[#allocation28_spill] sm:$0xff] }
 0x26f   : > { %4344 = vmatprep.subr.bf16.mxu1 %v4343_v57  ;;  %4130 = vmatmul.mubr.msk.f32.vlgmr.msra.gmra.mrb[18].mxu0 %vm2302_vm1, %v2279_v35  ;;  %v2229_v4 = vadd.f32 %v5581_v46, %v2196_v60  ;;  %v2165_v45 = vmul.f32 0.5, %v2133_v0  ;;  %v2167_v27 = vmul.f32 0.5, %v2135_v43  ;;  %v2168_v31 = vmul.f32 0.5, %v2136_v40  ;;  %v2286_v38 = vld [vmem:[#allocation9 + $0x60] sm:$0xff]  ;;  %v6299_v35 = vld [vmem:[#allocation33_spill] sm:$0xff] }
 0x270   : > { %v4522_v14 = vpop.eup %4521  ;;  %4346 = vmatpush3.bf16.msra.mxu1 %v4343_v57  ;;  %4348 = vmatprep.subr.bf16.mxu0 %v4347_v26  ;;  %v4355_v8 = vpack.c.bf16 %v2263_v61, %v2262_v63  ;;  %v2260_v25 = vmul.f32 %v2228_v42, %v6293_v1  ;;  %v2166_v58 = vmul.f32 0.5, %v2134_v52  ;;  %v2207_v48 = vmul.f32 %v5578_v21, %v5686_v24  ;;  %v6300_v0 = vld [vmem:[#allocation32_spill] sm:$0xff]  ;;  %v6301_v57 = vld [vmem:[#allocation31_spill] sm:$0xff]  ;;  %v2287_v40 = vld [vmem:[#allocation9 + $0x68] sm:$0xff] }
 0x271   : > { %v4524_v39 = vpop.eup %4523  ;;  %4350 = vmatpush3.bf16.msra.mxu0 %v4347_v26  ;;  %v2261_v41 = vmul.f32 %v2229_v4, %v6294_v54  ;;  %v2199_v13 = vmul.f32 %v5578_v21, %v2165_v45  ;;  %v2201_v34 = vmul.f32 %v5578_v21, %v2167_v27  ;;  %v2202_v6 = vmul.f32 %v5578_v21, %v2168_v31  ;;  %v2289_v26 = vld [vmem:[#allocation9 + $0x78] sm:$0xff]  ;;  %v2295_v27 = vpop.permute.xlu0 %2294 }
 0x272   : > { %4356 = vmatprep.subr.bf16.mxu1 %v4355_v8  ;;  %v2200_v50 = vmul.f32 %v5578_v21, %v2166_v58  ;;  %4151 = vmatprep.mubr.msk.f32.mxu0 %vm2302_vm1, %v2282_v9  ;;  %v2137_v7 = vadd.f32 1.0, %v4522_v14  ;;  %v2138_v28 = vadd.f32 1.0, %v4524_v39  ;;  %v2240_v62 = vadd.f32 %v5581_v46, %v2207_v48 }
 0x273   : > { %4141 = vmatmul.mubr.msk.f32.vlgmr.msra.gmra.mrb[18].mxu1 %vm2302_vm1, %v2281_v30  ;;  %v4351_v23 = vpack.c.bf16 %v2261_v41, %v2260_v25  ;;  %v2232_v17 = vadd.f32 %v5581_v46, %v2199_v13  ;;  %v2234_v47 = vadd.f32 %v5581_v46, %v2201_v34  ;;  %v2235_v33 = vadd.f32 %v5581_v46, %v2202_v6 }
 0x274   : > { %4358 = vmatpush3.bf16.msra.mxu1 %v4355_v8  ;;  %v2233_v15 = vadd.f32 %v5581_v46, %v2200_v50  ;;  %4162 = vmatprep.mubr.msk.f32.mxu1 %vm2302_vm1, %v2284_v59  ;;  %v2169_v24 = vmul.f32 0.5, %v2137_v7  ;;  %v2170_v53 = vmul.f32 0.5, %v2138_v28  ;;  %v2272_v22 = vmul.f32 %v2240_v62, %v6299_v35 }
 0x275   : > { %4352 = vmatprep.subr.bf16.mxu0 %v4351_v23  ;;  %v2264_v55 = vmul.f32 %v2232_v17, %v6295_v5  ;;  %v2266_v49 = vmul.f32 %v2234_v47, %v6296_v3  ;;  %v2267_v10 = vmul.f32 %v2235_v33, %v6297_v36 }
 0x276   : > { %v2265_v29 = vmul.f32 %v2233_v15, %v6298_v19  ;;  %4354 = vmatpush3.bf16.msra.mxu0 %v4351_v23  ;;  %v2203_v16 = vmul.f32 %v5578_v21, %v2169_v24  ;;  %v2204_v32 = vmul.f32 %v5578_v21, %v2170_v53  ;;  %v2285_v21 = vld [vmem:[#allocation9 + $0x58] sm:$0xff]  ;;  %v4375_v60 = vpack.c.bf16 %v5668_v51, %v2272_v22  ;;  %v2300_v51 = vpop.permute.xlu1 %2299 }
 0x277   : > { %v4363_v43 = vpack.c.bf16 %v2267_v10, %v2266_v49 }
 0x278   : > { %v4359_v12 = vpack.c.bf16 %v2265_v29, %v2264_v55  ;;  %v2236_v56 = vadd.f32 %v5581_v46, %v2203_v16  ;;  %v2237_v11 = vadd.f32 %v5581_v46, %v2204_v32  ;;  %v2288_v46 = vld [vmem:[#allocation9 + $0x70] sm:$0xff] }
 0x279   : > { %4364 = vmatprep.subr.bf16.mxu0 %v4363_v43  ;;  %4152 = vmatmul.mubr.msk.f32.vlgmr.msra.gmra.mrb[20].mxu0 %vm2302_vm1, %v2283_v18 }
 0x27a   : > { %4360 = vmatprep.subr.bf16.mxu1 %v4359_v12  ;;  %4366 = vmatpush3.bf16.msra.mxu0 %v4363_v43  ;;  %v2268_v37 = vmul.f32 %v2236_v56, %v6300_v0  ;;  %v2269_v20 = vmul.f32 %v2237_v11, %v6301_v57 }
 0x27b   : > { %4362 = vmatpush3.bf16.msra.mxu1 %v4359_v12  ;;  %4173 = vmatprep.mubr.msk.f32.mxu0 %vm2302_vm1, %v2286_v38 }
 0x27c   : > { %4372 = vmatprep.subr.bf16.mxu1 %v5706_v44  ;;  %v4367_v63 = vpack.c.bf16 %v2269_v20, %v2268_v37 }
 0x27e   : > { %4163 = vmatmul.mubr.msk.f32.vlgmr.msra.gmra.mrb[20].mxu1 %vm2302_vm1, %v2285_v21  ;;  %4368 = vmatprep.subr.bf16.mxu0 %v4367_v63 }
 0x27f   : > { %4374 = vmatpush3.bf16.msra.mxu1 %v5706_v44  ;;  %4370 = vmatpush3.bf16.msra.mxu0 %v4367_v63 }
 0x280   : > { %4376 = vmatprep.subr.bf16.mxu1 %v4375_v60  ;;  %4184 = vmatprep.mubr.msk.f32.mxu1 %vm2302_vm1, %v2288_v46 }
 0x282   : > { %4174 = vmatmul.mubr.msk.f32.vlgmr.msra.gmra.mrb[22].mxu0 %vm2302_vm1, %v2287_v40 }
 0x283   : > { %4378 = vmatpush3.bf16.msra.mxu1 %v4375_v60 }
 0x286   : > { %4185 = vmatmul.mubr.msk.f32.vlgmr.msra.gmra.mrb[22].mxu1 %vm2302_vm1, %v2289_v26 }
 0x337   : > { %v4109_v2 = vpop.f32.mrb[16].mxu0 }
 0x338   : > { %v2375_v61 = vpop.f32.mrb[17].mxu0  ;;  %v5784_v44 = vadd.f32 %v4109_v2, %v2300_v51 }
 0x339   : > { %v4120_v42 = vpop.f32.mrb[16].mxu1  ;;  %v5788_v14 = vadd.f32 %v2375_v61, %v2295_v27 }
 0x33a   : > { %v2456_v52 = vpop.f32.mrb[17].mxu1  ;;  %v5786_v31 = vadd.f32 %v4120_v42, %v2300_v51 }
 0x33b   : > { %v5790_v8 = vadd.f32 %v2456_v52, %v2295_v27 }
 0x33c   : > { %v2959_v58 = vadd.f32 %v5786_v31, %v5784_v44 }
 0x33d   : > { %v2952_v39 = vadd.f32 %v5790_v8, %v5788_v14 }
 0x342   : > { %v4131_v4 = vpop.f32.mrb[18].mxu0 }
 0x343   : > { %v2537_v45 = vpop.f32.mrb[19].mxu0  ;;  %v5792_v1 = vadd.f32 %v4131_v4, %v2300_v51 }
 0x344   : > { %v5794_v25 = vadd.f32 %v2537_v45, %v2295_v27 }
 0x345   : > { %v2960_v54 = vadd.f32 %v2959_v58, %v5792_v1 }
 0x346   : > { %v4142_v9 = vpop.f32.mrb[18].mxu1  ;;  %v2953_v13 = vadd.f32 %v2952_v39, %v5794_v25 }
 0x347   : > { %v2618_v30 = vpop.f32.mrb[19].mxu1  ;;  %v5802_v6 = vadd.f32 %v4142_v9, %v2300_v51 }
 0x348   : > { %v5806_v48 = vadd.f32 %v2618_v30, %v2295_v27 }
 0x349   : > { %v2961_v7 = vadd.f32 %v2960_v54, %v5802_v6 }
 0x34a   : > { %v2954_v28 = vadd.f32 %v2953_v13, %v5806_v48 }
 0x34c   : > { %v4153_v41 = vpop.f32.mrb[20].mxu0 }
 0x34d   : > { %v2699_v34 = vpop.f32.mrb[21].mxu0  ;;  %v5804_v59 = vadd.f32 %v4153_v41, %v2300_v51 }
 0x34e   : > { %v5808_v50 = vadd.f32 %v2699_v34, %v2295_v27 }
 0x34f   : > { %v2962_v17 = vadd.f32 %v2961_v7, %v5804_v59 }
 0x350   : > { %v2955_v33 = vadd.f32 %v2954_v28, %v5808_v50 }
 0x351   : > { %v4164_v23 = vpop.f32.mrb[20].mxu1 }
 0x352   : > { %v2780_v47 = vpop.f32.mrb[21].mxu1  ;;  %v5814_v15 = vadd.f32 %v4164_v23, %v2300_v51 }
 0x353   : > { %v5816_v24 = vadd.f32 %v2780_v47, %v2295_v27 }
 0x354   : > { %v2963_v5 = vadd.f32 %v2962_v17, %v5814_v15 }
 0x355   : > { %v4175_v53 = vpop.f32.mrb[22].mxu0  ;;  %v2956_v49 = vadd.f32 %v2955_v33, %v5816_v24 }
 0x356   : > { %v5819_v55 = vadd.f32 %v4175_v53, %v2300_v51  ;;  %v2861_v3 = vpop.f32.mrb[23].mxu0 }
 0x357   : > { %v5822_v36 = vadd.f32 %v2861_v3, %v2295_v27 }
 0x358   : > { %v2964_v10 = vadd.f32 %v2963_v5, %v5819_v55 }
 0x359   : > { %v4186_v62 = vpop.f32.mrb[22].mxu1  ;;  %v2957_v19 = vadd.f32 %v2956_v49, %v5822_v36 }
 0x35a   : > { %v5826_v29 = vadd.f32 %v4186_v62, %v2300_v51  ;;  %v2942_v18 = vpop.f32.mrb[23].mxu1 }
 0x35b   : > { %v5828_v16 = vadd.f32 %v2942_v18, %v2295_v27 }
 0x35c   : > { %v2965_v32 = vadd.f32 %v2964_v10, %v5826_v29 }
 0x35d   : > { %v2958_v43 = vadd.f32 %v2957_v19, %v5828_v16 }
 0x35e   : > { %v2967_v12 = vmul.f32 0.125, %v2965_v32 }
 0x35f   : > { %v2966_v35 = vmul.f32 0.125, %v2958_v43 }
 0x360   : > { %v2969_v56 = vsub.f32 %v5784_v44, %v2967_v12  ;;  %v2971_v11 = vsub.f32 %v5786_v31, %v2967_v12  ;;  %v2973_v38 = vsub.f32 %v5792_v1, %v2967_v12  ;;  %v2975_v22 = vsub.f32 %v5802_v6, %v2967_v12 }
 0x361   : > { %v2977_v57 = vsub.f32 %v5804_v59, %v2967_v12  ;;  %v2968_v63 = vsub.f32 %v5788_v14, %v2966_v35  ;;  %v2970_v46 = vsub.f32 %v5790_v8, %v2966_v35  ;;  %v5840_v60 = vsub.f32 %v5794_v25, %v2966_v35 }
 0x362   : > { %v2985_v0 = vmul.f32 %v2969_v56, %v2969_v56  ;;  %v2987_v37 = vmul.f32 %v2971_v11, %v2971_v11  ;;  %v2989_v20 = vmul.f32 %v2973_v38, %v2973_v38  ;;  %v2979_v40 = vsub.f32 %v5814_v15, %v2967_v12 }
 0x363   : > { %v2991_v26 = vmul.f32 %v2975_v22, %v2975_v22  ;;  %v5844_v61 = vsub.f32 %v5806_v48, %v2966_v35  ;;  %v2984_v42 = vmul.f32 %v2968_v63, %v2968_v63  ;;  %v2986_v52 = vmul.f32 %v2970_v46, %v2970_v46 }
 0x364   : > { %v3007_v21 = vadd.f32 %v2987_v37, %v2985_v0  ;;  %v2981_v4 = vsub.f32 %v5819_v55, %v2967_v12  ;;  %v2993_v45 = vmul.f32 %v2977_v57, %v2977_v57  ;;  %v2976_v27 = vsub.f32 %v5808_v50, %v2966_v35 }
 0x365   : > { %v2988_v9 = vmul.f32 %v5840_v60, %v5840_v60  ;;  %v3000_v30 = vadd.f32 %v2986_v52, %v2984_v42  ;;  %v2983_v58 = vsub.f32 %v5826_v29, %v2967_v12  ;;  %v2995_v39 = vmul.f32 %v2979_v40, %v2979_v40 }
 0x366   : > { %v3008_v2 = vadd.f32 %v3007_v21, %v2989_v20  ;;  %v2978_v41 = vsub.f32 %v5816_v24, %v2966_v35  ;;  %v2990_v13 = vmul.f32 %v5844_v61, %v5844_v61  ;;  %v2997_v7 = vmul.f32 %v2981_v4, %v2981_v4 }
 0x367   : > { %v3001_v34 = vadd.f32 %v3000_v30, %v2988_v9  ;;  %v2980_v23 = vsub.f32 %v5822_v36, %v2966_v35  ;;  %v2992_v17 = vmul.f32 %v2976_v27, %v2976_v27  ;;  %v2999_v33 = vmul.f32 %v2983_v58, %v2983_v58 }
 0x368   : > { %v3009_v51 = vadd.f32 %v3008_v2, %v2991_v26  ;;  %v2982_v5 = vsub.f32 %v5828_v16, %v2966_v35  ;;  %v2994_v3 = vmul.f32 %v2978_v41, %v2978_v41 }
 0x369   : > { %v3002_v47 = vadd.f32 %v3001_v34, %v2990_v13  ;;  %v2996_v62 = vmul.f32 %v2980_v23, %v2980_v23 }
 0x36a   : > { %v3010_v54 = vadd.f32 %v3009_v51, %v2993_v45  ;;  %v2998_v32 = vmul.f32 %v2982_v5, %v2982_v5 }
 0x36b   : > { %v3003_v49 = vadd.f32 %v3002_v47, %v2992_v17 }
 0x36c   : > { %v3011_v28 = vadd.f32 %v3010_v54, %v2995_v39 }
 0x36d   : > { %v3004_v19 = vadd.f32 %v3003_v49, %v2994_v3 }
 0x36e   : > { %v3012_v53 = vadd.f32 %v3011_v28, %v2997_v7 }
 0x36f   : > { %v3005_v43 = vadd.f32 %v3004_v19, %v2996_v62 }
 0x370   : > { %v3013_v10 = vadd.f32 %v3012_v53, %v2999_v33 }
 0x371   : > { %v3006_v0 = vadd.f32 %v3005_v43, %v2998_v32 }
 0x372   : > { %v3015_v18 = vmul.f32 0.14285715, %v3013_v10 }
 0x373   : > { %v3014_v37 = vmul.f32 0.14285715, %v3006_v0 }
 0x374   : > { %v3017_v12 = vadd.f32 1e-09, %v3015_v18 }
 0x375   : > { %v3016_v20 = vadd.f32 1e-09, %v3014_v37  ;;  %v5864_v37 = vstv %s5856_s23 }
 0x376   : > { %4525 = vrsqrt.f32 %v3017_v12 }
 0x377   : > { %4527 = vrsqrt.f32 %v3016_v20 }
 0x380   : > { %v4526_v21 = vpop.eup %4525 }
 0x381   : > { %v3021_v26 = vmul.f32 %v4526_v21, %v2969_v56  ;;  %v3023_v2 = vmul.f32 %v4526_v21, %v2971_v11  ;;  %v3025_v42 = vmul.f32 %v4526_v21, %v2973_v38  ;;  %v3027_v52 = vmul.f32 %v4526_v21, %v2975_v22  ;;  %v4528_v54 = vpop.eup %4527 }
 0x382   : > { %v3029_v35 = vmul.f32 %v4526_v21, %v2977_v57  ;;  %v3031_v45 = vmul.f32 %v4526_v21, %v2979_v40  ;;  %v3033_v51 = vmul.f32 %v4526_v21, %v2981_v4  ;;  %v3035_v13 = vmul.f32 %v4526_v21, %v2983_v58 }
 0x383   : > { %v3037_v9 = vmul.f32 0.5, %v3021_v26  ;;  %v3039_v30 = vmul.f32 0.5, %v3023_v2  ;;  %v3041_v39 = vmul.f32 0.5, %v3025_v42  ;;  %v3043_v34 = vmul.f32 0.5, %v3027_v52 }
 0x384   : > { %v3045_v7 = vmul.f32 0.5, %v3029_v35  ;;  %v3020_v28 = vmul.f32 %v4528_v54, %v2968_v63  ;;  %v3047_v17 = vmul.f32 0.5, %v3031_v45  ;;  %v3022_v56 = vmul.f32 %v4528_v54, %v2970_v46 }
 0x385   : > { %4529 = vtanh.f32 %v3037_v9  ;;  %v3049_v11 = vmul.f32 0.5, %v3033_v51  ;;  %v3024_v38 = vmul.f32 %v4528_v54, %v5840_v60  ;;  %v3051_v22 = vmul.f32 0.5, %v3035_v13 }
 0x386   : > { %4531 = vtanh.f32 %v3039_v30  ;;  %v3026_v57 = vmul.f32 %v4528_v54, %v5844_v61  ;;  %v3028_v40 = vmul.f32 %v4528_v54, %v2976_v27  ;;  %v3036_v4 = vmul.f32 0.5, %v3020_v28 }
 0x387   : > { %4533 = vtanh.f32 %v3041_v39  ;;  %v3030_v58 = vmul.f32 %v4528_v54, %v2978_v41  ;;  %v3038_v47 = vmul.f32 0.5, %v3022_v56  ;;  %v3032_v63 = vmul.f32 %v4528_v54, %v2980_v23 }
 0x388   : > { %4535 = vtanh.f32 %v3043_v34  ;;  %v3040_v33 = vmul.f32 0.5, %v3024_v38  ;;  %v3034_v46 = vmul.f32 %v4528_v54, %v2982_v5  ;;  %v3042_v53 = vmul.f32 0.5, %v3026_v57 }
 0x389   : > { %4537 = vtanh.f32 %v3045_v7  ;;  %v3044_v3 = vmul.f32 0.5, %v3028_v40  ;;  %v3046_v60 = vmul.f32 0.5, %v3030_v58  ;;  %v3048_v10 = vmul.f32 0.5, %v3032_v63 }
 0x38a   : > { %4539 = vtanh.f32 %v3047_v17  ;;  %v3050_v62 = vmul.f32 0.5, %v3034_v46  ;;  %v5861_v23 = vstv %s3100_s17  ;;  %v3270_v54 = vlaneseq  ;;  %v5879_v46 = vpop.permute.xlu1 %3160 }
 0x38b   : > { %4541 = vtanh.f32 %v3049_v11 }
 0x38c   : > { %4543 = vtanh.f32 %v3051_v22 }
 0x38d   : > { %4545 = vtanh.f32 %v3036_v4 }
 0x38e   : > { %4547 = vtanh.f32 %v3038_v47 }
 0x38f   : > { %v4530_v49 = vpop.eup %4529  ;;  %4549 = vtanh.f32 %v3040_v33 }
 0x390   : > { %v4532_v61 = vpop.eup %4531  ;;  %v3069_v27 = vadd.f32 1.0, %v4530_v49  ;;  %4551 = vtanh.f32 %v3042_v53 }
 0x391   : > { %v4534_v41 = vpop.eup %4533  ;;  %v3071_v19 = vadd.f32 1.0, %v4532_v61  ;;  %4553 = vtanh.f32 %v3044_v3 }
 0x392   : > { %v4536_v5 = vpop.eup %4535  ;;  %v3073_v18 = vadd.f32 1.0, %v4534_v41  ;;  %v3085_v32 = vmul.f32 0.5, %v3069_v27  ;;  %4555 = vtanh.f32 %v3046_v60 }
 0x393   : > { %v4538_v43 = vpop.eup %4537  ;;  %v3075_v12 = vadd.f32 1.0, %v4536_v5  ;;  %v3087_v0 = vmul.f32 0.5, %v3071_v19  ;;  %4557 = vtanh.f32 %v3048_v10 }
 0x394   : > { %v4540_v20 = vpop.eup %4539  ;;  %v3077_v21 = vadd.f32 1.0, %v4538_v43  ;;  %v3089_v26 = vmul.f32 0.5, %v3073_v18  ;;  %4559 = vtanh.f32 %v3050_v62  ;;  %v3103_v2 = vmul.f32 %v5861_v23, %v3085_v32 }
 0x395   : > { %v4542_v42 = vpop.eup %4541  ;;  %v3079_v52 = vadd.f32 1.0, %v4540_v20  ;;  %v3091_v35 = vmul.f32 0.5, %v3075_v12  ;;  %v3105_v45 = vmul.f32 %v5861_v23, %v3087_v0 }
 0x396   : > { %v4544_v51 = vpop.eup %4543  ;;  %v3081_v9 = vadd.f32 1.0, %v4542_v42  ;;  %v3093_v30 = vmul.f32 0.5, %v3077_v21  ;;  %v3120_v39 = vadd.f32 %v5864_v37, %v3103_v2  ;;  %v3107_v17 = vmul.f32 %v5861_v23, %v3089_v26 }
 0x397   : > { %v4546_v13 = vpop.eup %4545  ;;  %v3083_v34 = vadd.f32 1.0, %v4544_v51  ;;  %v3095_v7 = vmul.f32 0.5, %v3079_v52  ;;  %v3122_v28 = vadd.f32 %v5864_v37, %v3105_v45  ;;  %v5872_v38 = vmul.f32 %v5861_v23, %v3091_v35 }
 0x398   : > { %v4548_v56 = vpop.eup %4547  ;;  %v3097_v11 = vmul.f32 0.5, %v3081_v9  ;;  %v3068_v22 = vadd.f32 1.0, %v4546_v13  ;;  %v3136_v57 = vmul.f32 %v3120_v39, %v5784_v44  ;;  %v5876_v58 = vmul.f32 %v5861_v23, %v3093_v30 }
 0x399   : > { %v4550_v40 = vpop.eup %4549  ;;  %v3099_v4 = vmul.f32 0.5, %v3083_v34  ;;  %v3113_v47 = vmul.f32 %v5861_v23, %v3095_v7  ;;  %v3070_v63 = vadd.f32 1.0, %v4548_v56  ;;  %v3138_v49 = vmul.f32 %v3122_v28, %v5786_v31  ;;  %v5900_v7 = vpop.permute.xlu0 %3155 }
 0x39a   : > { %v4552_v33 = vpop.eup %4551  ;;  %v5882_v53 = vmul.f32 %v5861_v23, %v3097_v11  ;;  %v3072_v3 = vadd.f32 1.0, %v4550_v40  ;;  %v3084_v60 = vmul.f32 0.5, %v3068_v22  ;;  %v3164_v62 = vmul.f32 %v5879_v46, %v3136_v57 }
 0x39b   : > { %v4554_v10 = vpop.eup %4553  ;;  %v3117_v44 = vmul.f32 %v5861_v23, %v3099_v4  ;;  %v3074_v61 = vadd.f32 1.0, %v4552_v33  ;;  %v3086_v27 = vmul.f32 0.5, %v3070_v63  ;;  %v5888_v19 = vadd.f32 %v5864_v37, %v3113_v47 }
 0x39c   : > { %v4556_v41 = vpop.eup %4555  ;;  %v3076_v5 = vadd.f32 1.0, %v4554_v10  ;;  %v3088_v18 = vmul.f32 0.5, %v3072_v3  ;;  %v3102_v32 = vmul.f32 %v5861_v23, %v3084_v60  ;;  %v3166_v52 = vmul.f32 %v5879_v46, %v3138_v49 }
 0x39d   : > { %v4558_v43 = vpop.eup %4557  ;;  %v3134_v12 = vadd.f32 %v5864_v37, %v3117_v44  ;;  %v3078_v0 = vadd.f32 1.0, %v4556_v41  ;;  %v3090_v31 = vmul.f32 0.5, %v3074_v61  ;;  %v3104_v20 = vmul.f32 %v5861_v23, %v3086_v27 }
 0x39e   : > { %v4560_v21 = vpop.eup %4559  ;;  %v3080_v26 = vadd.f32 1.0, %v4558_v43  ;;  %v3092_v2 = vmul.f32 0.5, %v3076_v5  ;;  %v3119_v42 = vadd.f32 %v5864_v37, %v3102_v32  ;;  %v3124_v40 = vadd.f32 %v5864_v37, %v3107_v17 }
 0x39f   : > { %v3150_v35 = vmul.f32 %v3134_v12, %v5826_v29  ;;  %v3082_v45 = vadd.f32 1.0, %v4560_v21  ;;  %v3094_v51 = vmul.f32 0.5, %v3078_v0  ;;  %v3108_v9 = vmul.f32 %v5861_v23, %v3090_v31 }
 0x3a0   : > { %v3096_v30 = vmul.f32 0.5, %v3080_v26  ;;  %v3110_v39 = vmul.f32 %v5861_v23, %v3092_v2  ;;  %v3135_v13 = vmul.f32 %v3119_v42, %v5788_v14  ;;  %v3121_v34 = vadd.f32 %v5864_v37, %v3104_v20 }
 0x3a1   : > { %v3178_v28 = vmul.f32 %v5879_v46, %v3150_v35  ;;  %v3098_v56 = vmul.f32 0.5, %v3082_v45  ;;  %v3112_v11 = vmul.f32 %v5861_v23, %v3094_v51  ;;  %v3106_v29 = vmul.f32 %v5861_v23, %v3088_v18 }
 0x3a2   : > { %v3114_v22 = vmul.f32 %v5861_v23, %v3096_v30  ;;  %v3163_v57 = vmul.f32 %v5900_v7, %v3135_v13  ;;  %v3137_v14 = vmul.f32 %v3121_v34, %v5790_v8  ;;  %v3125_v33 = vadd.f32 %v5864_v37, %v3108_v9 }
 0x3a3   : > { %v3116_v4 = vmul.f32 %v5861_v23, %v3098_v56  ;;  %v3129_v47 = vadd.f32 %v5864_v37, %v3112_v11  ;;  %v3123_v63 = vadd.f32 %v5864_v37, %v3106_v29  ;;  %v3140_v10 = vmul.f32 %v3124_v40, %v5792_v1 }
 0x3a4   : > { %v3131_v3 = vadd.f32 %v5864_v37, %v3114_v22  ;;  %v3179_v60 = vadd.f32 %v3164_v62, %v3163_v57  ;;  %v3165_v49 = vmul.f32 %v5900_v7, %v3137_v14  ;;  %v3126_v17 = vadd.f32 %v5864_v37, %v5872_v38 }
 0x3a5   : > { %v3133_v8 = vadd.f32 %v5864_v37, %v3116_v4  ;;  %v3139_v23 = vmul.f32 %v3123_v63, %v5794_v25  ;;  %v3141_v44 = vmul.f32 %v3125_v33, %v5806_v48  ;;  %v3168_v62 = vmul.f32 %v5879_v46, %v3140_v10 }
 0x3a6   : > { %v3180_v61 = vrot.slane %v3179_v60, 4  ;;  %v3186_v27 = vadd.f32 %v3166_v52, %v3165_v49  ;;  %v3127_v41 = vadd.f32 %v5864_v37, %v3110_v39  ;;  %v3142_v18 = vmul.f32 %v3126_v17, %v5802_v6 }
 0x3a7   : > { %v3149_v1 = vmul.f32 %v3133_v8, %v5828_v16  ;;  %v3167_v5 = vmul.f32 %v5900_v7, %v3139_v23  ;;  %v3169_v25 = vmul.f32 %v5900_v7, %v3141_v44  ;;  %v3128_v38 = vadd.f32 %v5864_v37, %v5876_v58 }
 0x3a8   : > { %v3181_v32 = vadd.f32 %v3180_v61, %v3179_v60  ;;  %v3187_v43 = vrot.slane %v3186_v27, 4  ;;  %v3143_v48 = vmul.f32 %v3127_v41, %v5808_v50  ;;  %v3170_v16 = vmul.f32 %v5879_v46, %v3142_v18 }
 0x3a9   : > { %v3177_v12 = vmul.f32 %v5900_v7, %v3149_v1  ;;  %v3193_v0 = vadd.f32 %v3168_v62, %v3167_v5  ;;  %v3145_v31 = vmul.f32 %v3129_v47, %v5816_v24  ;;  %v3144_v21 = vmul.f32 %v3128_v38, %v5804_v59  ;;  %v4561_v5 = vld [vmem:[%s4986_s19 + $0x8] sm:$0xff] }
 0x3aa   : > { %v3182_v20 = vrot.slane %v3181_v32, 2  ;;  %v3188_v6 = vadd.f32 %v3187_v43, %v3186_v27  ;;  %v3171_v26 = vmul.f32 %v5900_v7, %v3143_v48  ;;  %v3200_v42 = vadd.f32 %v3170_v16, %v3169_v25  ;;  %v4562_v25 = vld [vmem:[%s4986_s19] sm:$0xff]  ;;  %v4564_v16 = vld [vmem:[%s4986_s19 + $0x10] sm:$0xff] }
 0x3ab   : > { %v5944_v2 = vadd.f32 %v3178_v28, %v3177_v12  ;;  %v3194_v58 = vrot.slane %v3193_v0, 4  ;;  %v3146_v50 = vmul.f32 %v5888_v19, %v5814_v15  ;;  %v3132_v52 = vadd.f32 %v5864_v37, %v5882_v53  ;;  %v5961_v53 = vld [vmem:[%s617_s21] sm:$0xff] }
 0x3ac   : > { %v3183_v24 = vadd.f32 %v3182_v20, %v3181_v32  ;;  %v3189_v35 = vrot.slane %v3188_v6, 2  ;;  %v3172_v59 = vmul.f32 %v5879_v46, %v3144_v21  ;;  %v5955_v45 = vstv %s5915_s15  ;;  %v4563_v12 = vld [vmem:[%s4986_s19 + $0x20] sm:$0xff]  ;;  %v4565_v21 = vld [vmem:[%s4986_s19 + $0x18] sm:$0xff] }
 0x3ad   : > { %v5958_v51 = vshrl.u32 %v3270_v54, 7  ;;  %v3195_v9 = vadd.f32 %v3194_v58, %v3193_v0  ;;  %v3201_v30 = vrot.slane %v3200_v42, 4  ;;  %v3147_v37 = vmul.f32 %v3131_v3, %v5822_v36 }
 0x3ae   : > { %v3184_v39 = vrot.slane %v3183_v24, 1  ;;  %v3190_v15 = vadd.f32 %v3189_v35, %v3188_v6  ;;  %v3207_v19 = vadd.f32 %v3172_v59, %v3171_v26  ;;  %v3173_v28 = vmul.f32 %v5900_v7, %v3145_v31 }
 0x3af   : > { %v3196_v13 = vrot.slane %v3195_v9, 2  ;;  %v3202_v34 = vadd.f32 %v3201_v30, %v3200_v42  ;;  %v3174_v56 = vmul.f32 %v5879_v46, %v3146_v50  ;;  %v3148_v57 = vmul.f32 %v3132_v52, %v5819_v55  ;;  %v4566_v52 = vld [vmem:[%s4986_s19 + $0x30] sm:$0xff]  ;;  %v4567_v30 = vld [vmem:[%s4986_s19 + $0x28] sm:$0xff] }
 0x3b0   : > { %v3185_v11 = vadd.f32 %v3184_v39, %v3183_v24  ;;  %v3191_v29 = vrot.slane %v3190_v15, 1  ;;  %v3208_v22 = vrot.slane %v3207_v19, 4  ;;  %v5967_v14 = vsub.s32 0, %v5958_v51 }
 0x3b1   : > { %v3197_v40 = vadd.f32 %v3196_v13, %v3195_v9  ;;  %v3203_v4 = vrot.slane %v3202_v34, 2  ;;  %v3247_v63 = vrot.slane %v5961_v53, 1  ;;  %v3175_v33 = vmul.f32 %v5900_v7, %v3147_v37 }
 0x3b2   : > { %v3237_v36 = vadd.f32 %v5955_v45, %v3185_v11  ;;  %v3192_v47 = vadd.f32 %v3191_v29, %v3190_v15  ;;  %v3209_v49 = vadd.f32 %v3208_v22, %v3207_v19  ;;  %v3214_v10 = vadd.f32 %v3174_v56, %v3173_v28  ;;  %v4568_v19 = vld [vmem:[%s4986_s19 + $0x40] sm:$0xff]  ;;  %v4569_v11 = vld [vmem:[%s4986_s19 + $0x38] sm:$0xff] }
 0x3b3   : > { %v3198_v3 = vrot.slane %v3197_v40, 1  ;;  %v3204_v60 = vadd.f32 %v3203_v4, %v3202_v34  ;;  %v3176_v23 = vmul.f32 %v5879_v46, %v3148_v57  ;;  %v3248_v7 = vrot.slane %v5961_v53, 2 }
 0x3b4   : > { %v3262_v55 = vmul.f32 %v5961_v53, %v3237_v36  ;;  %v3238_v8 = vadd.f32 %v5955_v45, %v3192_v47  ;;  %v3210_v41 = vrot.slane %v3209_v49, 2  ;;  %v3215_v1 = vrot.slane %v3214_v10, 4 }
 0x3b5   : > { %v3199_v17 = vadd.f32 %v3198_v3, %v3197_v40  ;;  %v3221_v27 = vadd.f32 %v3176_v23, %v3175_v33  ;;  %v3205_v62 = vrot.slane %v3204_v60, 1  ;;  %v3249_v42 = vrot.slane %v5961_v53, 3  ;;  %v4570_v40 = vld [vmem:[%s4986_s19 + $0x50] sm:$0xff] }
 0x3b6   : > { %v3273_v44 = vrot.slane %v3262_v55, %v5967_v14  ;;  %v3263_v61 = vmul.f32 %v3247_v63, %v3238_v8  ;;  %v3216_v48 = vadd.f32 %v3215_v1, %v3214_v10  ;;  %v3211_v6 = vadd.f32 %v3210_v41, %v3209_v49  ;;  %v4572_v10 = vld [vmem:[%s4986_s19 + $0x48] sm:$0xff] }
 0x3b7   : > { %v3239_v46 = vadd.f32 %v5955_v45, %v3199_v17  ;;  %v3206_v38 = vadd.f32 %v3205_v62, %v3204_v60  ;;  %v3222_v9 = vrot.slane %v3221_v27, 4  ;;  %v3229_v56 = vrot.slane %v5944_v2, 4  ;;  %v4571_v60 = vld [vmem:[%s4986_s19 + $0x60] sm:$0xff] }
 0x3b8   : > { %v3303_v18 = vmul.f32 %v4561_v5, %v3273_v44  ;;  %v3302_v32 = vmul.f32 %v4562_v25, %v3273_v44  ;;  %v3277_v43 = vrot.slane %v3263_v61, %v5967_v14  ;;  %v3304_v31 = vmul.f32 %v4564_v16, %v3273_v44 }
 0x3b9   : > { %v3264_v20 = vmul.f32 %v3248_v7, %v3239_v46  ;;  %v3305_v26 = vmul.f32 %v4565_v21, %v3273_v44  ;;  %v3240_v58 = vadd.f32 %v5955_v45, %v3206_v38  ;;  %v3217_v50 = vrot.slane %v3216_v48, 2  ;;  %v4573_v44 = vld [vmem:[%s4986_s19 + $0x58] sm:$0xff]  ;;  %v4574_v7 = vld [vmem:[%s4986_s19 + $0x70] sm:$0xff] }
 0x3ba   : > { %3336 = vadd.xlane.f32.xlu1 %v3303_v18  ;;  %3334 = vadd.xlane.f32.xlu0 %v3302_v32  ;;  %v3306_v0 = vmul.f32 %v4563_v12, %v3277_v43  ;;  %v3308_v24 = vmul.f32 %v4566_v52, %v3277_v43  ;;  %v3212_v59 = vrot.slane %v3211_v6, 1  ;;  %v3307_v39 = vmul.f32 %v4567_v30, %v3277_v43  ;;  %v4575_v18 = vld [vmem:[%s4986_s19 + $0x80] sm:$0xff]  ;;  %v4576_v32 = vld [vmem:[%s4986_s19 + $0x68] sm:$0xff]  ;;  %v4582_v30 = vld [vmem:[%s4986_s19 + $0x98] sm:$0xff] }
 0x3bb   : > { %v3281_v35 = vrot.slane %v3264_v20, %v5967_v14  ;;  %v3218_v15 = vadd.f32 %v3217_v50, %v3216_v48  ;;  %v3265_v13 = vmul.f32 %v3249_v42, %v3240_v58  ;;  %v3223_v28 = vadd.f32 %v3222_v9, %v3221_v27  ;;  %v4579_v58 = vld [vmem:[%s4986_s19 + $0xa0] sm:$0xff]  ;;  %v4580_v50 = vld [vmem:[%s4986_s19 + $0x88] sm:$0xff] }
 0x3bc   : > { %v3213_v34 = vadd.f32 %v3212_v59, %v3211_v6  ;;  %v3309_v29 = vmul.f32 %v4569_v11, %v3277_v43  ;;  %v3250_v22 = vrot.slane %v5961_v53, 4  ;;  %v3230_v33 = vadd.f32 %v3229_v56, %v5944_v2  ;;  %v4581_v59 = vld [vmem:[%s4986_s19 + $0xb0] sm:$0xff] }
 0x3bd   : > { %v3310_v37 = vmul.f32 %v4568_v19, %v3281_v35  ;;  %v3219_v57 = vrot.slane %v3218_v15, 1  ;;  %v3312_v4 = vmul.f32 %v4570_v40, %v3281_v35  ;;  %v3285_v36 = vrot.slane %v3265_v13, %v5967_v14 }
 0x3be   : > { %3342 = vadd.xlane.f32.xlu1 %v3306_v0  ;;  %3338 = vadd.xlane.f32.xlu0 %v3304_v31  ;;  %v3241_v47 = vadd.f32 %v5955_v45, %v3213_v34  ;;  %v3224_v63 = vrot.slane %v3223_v28, 2  ;;  %v3311_v55 = vmul.f32 %v4572_v10, %v3281_v35  ;;  %v3231_v17 = vrot.slane %v3230_v33, 2  ;;  %v4577_v0 = vld [vmem:[%s4986_s19 + $0x90] sm:$0xff]  ;;  %v4578_v31 = vld [vmem:[%s4986_s19 + $0x78] sm:$0xff]  ;;  %v4584_v34 = vld [vmem:[%s4986_s19 + $0xa8] sm:$0xff] }
 0x3bf   : > { %v3220_v3 = vadd.f32 %v3219_v57, %v3218_v15  ;;  %v3314_v49 = vmul.f32 %v4571_v60, %v3285_v36  ;;  %v3313_v61 = vmul.f32 %v4573_v44, %v3281_v35  ;;  %v3251_v27 = vrot.slane %v5961_v53, 5  ;;  %v4587_v57 = vld [vmem:[%s4986_s19 + $0xe0] sm:$0xff]  ;;  %v4591_v60 = vld [vmem:[%s4986_s19 + $0xe8] sm:$0xff]  ;;  %v4592_v10 = vld [vmem:[%s4986_s19 + $0xf8] sm:$0xff] }
 0x3c0   : > { %v3266_v8 = vmul.f32 %v3250_v22, %v3241_v47  ;;  %v3225_v23 = vadd.f32 %v3224_v63, %v3223_v28  ;;  %v3316_v62 = vmul.f32 %v4574_v7, %v3285_v36  ;;  %v3232_v5 = vadd.f32 %v3231_v17, %v3230_v33  ;;  %v4589_v47 = vld [vmem:[%s4986_s19 + $0xf0] sm:$0xff]  ;;  %v4590_v33 = vld [vmem:[%s4986_s19 + $0xd8] sm:$0xff] }
 0x3c1   : > { %v3242_v41 = vadd.f32 %v5955_v45, %v3220_v3  ;;  %v3315_v43 = vmul.f32 %v4576_v32, %v3285_v36  ;;  %v3252_v12 = vrot.slane %v5961_v53, 6  ;;  %v3317_v20 = vmul.f32 %v4578_v31, %v3285_v36 }
 0x3c2   : > { %3346 = vadd.xlane.f32.xlu1 %v3308_v24  ;;  %3340 = vadd.xlane.f32.xlu0 %v3305_v26  ;;  %v3289_v2 = vrot.slane %v3266_v8, %v5967_v14  ;;  %v3226_v1 = vrot.slane %v3225_v23, 1  ;;  %v3233_v48 = vrot.slane %v3232_v5, 1  ;;  %v3253_v35 = vrot.slane %v5961_v53, 7  ;;  %v4585_v53 = vld [vmem:[%s4986_s19 + $0xd0] sm:$0xff] }
 0x3c3   : > { %v3267_v46 = vmul.f32 %v3251_v27, %v3242_v41 }
 0x3c4   : > { %v3318_v25 = vmul.f32 %v4575_v18, %v3289_v2  ;;  %v3227_v38 = vadd.f32 %v3226_v1, %v3225_v23  ;;  %v3320_v16 = vmul.f32 %v4577_v0, %v3289_v2  ;;  %v3234_v26 = vadd.f32 %v3233_v48, %v3232_v5 }
 0x3c5   : > { %v3293_v6 = vrot.slane %v3267_v46, %v5967_v14  ;;  %v3319_v52 = vmul.f32 %v4580_v50, %v3289_v2 }
 0x3c6   : > { %3350 = vadd.xlane.f32.xlu1 %v3310_v37  ;;  %3344 = vadd.xlane.f32.xlu0 %v3307_v39  ;;  %v3243_v21 = vadd.f32 %v5955_v45, %v3227_v38  ;;  %v3321_v39 = vmul.f32 %v4582_v30, %v3289_v2  ;;  %v3244_v19 = vadd.f32 %v5955_v45, %v3234_v26  ;;  %v4583_v37 = vld [vmem:[%s4986_s19 + $0xc0] sm:$0xff] }
 0x3c7   : > { %v3322_v42 = vmul.f32 %v4579_v58, %v3293_v6  ;;  %v3324_v9 = vmul.f32 %v4581_v59, %v3293_v6  ;;  %v3323_v28 = vmul.f32 %v4584_v34, %v3293_v6 }
 0x3c8   : > { %v3268_v24 = vmul.f32 %v3252_v12, %v3243_v21  ;;  %v3269_v56 = vmul.f32 %v3253_v35, %v3244_v19 }
 0x3ca   : > { %3354 = vadd.xlane.f32.xlu1 %v3312_v4  ;;  %3348 = vadd.xlane.f32.xlu0 %v3309_v29  ;;  %v3297_v15 = vrot.slane %v3268_v24, %v5967_v14  ;;  %v4586_v29 = vld [vmem:[%s4986_s19 + $0xb8] sm:$0xff]  ;;  %v3301_v45 = vrot.slane %v3269_v56, %v5967_v14  ;;  %v4588_v4 = vld [vmem:[%s4986_s19 + $0xc8] sm:$0xff]  ;;  %v4732_v24 = vmov (!%p3774_p11), 0.0  }
 0x3cb   : > { %v3325_v22 = vmul.f32 %v4586_v29, %v3293_v6  ;;  %3402 = vst.msk [vmem:[#allocation11] sm:$0xff] (!%p3774_p11), %vm2302_vm1, %v4732_v24 }
 0x3cc   : > { %v3326_v13 = vmul.f32 %v4583_v37, %v3297_v15  ;;  %v3328_v11 = vmul.f32 %v4585_v53, %v3297_v15  ;;  %v3330_v40 = vmul.f32 %v4587_v57, %v3301_v45  ;;  %v3327_v36 = vmul.f32 %v4588_v4, %v3297_v15 }
 0x3cd   : > { %v3332_v63 = vmul.f32 %v4589_v47, %v3301_v45  ;;  %v3329_v3 = vmul.f32 %v4590_v33, %v3297_v15  ;;  %v3333_v14 = vmul.f32 %v4592_v10, %v3301_v45 }
 0x3ce   : > { %3358 = vadd.xlane.f32.xlu1 %v3314_v49  ;;  %3352 = vadd.xlane.f32.xlu0 %v3311_v55  ;;  %v3331_v49 = vmul.f32 %v4591_v60, %v3301_v45 }
 0x3d2   : > { %3362 = vadd.xlane.f32.xlu1 %v3316_v62  ;;  %3356 = vadd.xlane.f32.xlu0 %v3313_v61 }
 0x3d6   : > { %3366 = vadd.xlane.f32.xlu1 %v3318_v25  ;;  %3360 = vadd.xlane.f32.xlu0 %v3315_v43 }
 0x3da   : > { %3370 = vadd.xlane.f32.xlu1 %v3320_v16  ;;  %3364 = vadd.xlane.f32.xlu0 %v3317_v20 }
 0x3de   : > { %3374 = vadd.xlane.f32.xlu1 %v3322_v42  ;;  %3368 = vadd.xlane.f32.xlu0 %v3319_v52 }
 0x3e2   : > { %3378 = vadd.xlane.f32.xlu1 %v3324_v9  ;;  %3372 = vadd.xlane.f32.xlu0 %v3321_v39 }
 0x3e6   : > { %3382 = vadd.xlane.f32.xlu1 %v3326_v13  ;;  %3376 = vadd.xlane.f32.xlu0 %v3323_v28 }
 0x3ea   : > { %3386 = vadd.xlane.f32.xlu1 %v3328_v11  ;;  %3380 = vadd.xlane.f32.xlu0 %v3325_v22 }
 0x3ee   : > { %3390 = vadd.xlane.f32.xlu1 %v3330_v40  ;;  %3384 = vadd.xlane.f32.xlu0 %v3327_v36 }
 0x3f2   : > { %3394 = vadd.xlane.f32.xlu1 %v3332_v63  ;;  %3388 = vadd.xlane.f32.xlu0 %v3329_v3 }
 0x3f6   : > { %3392 = vadd.xlane.f32.xlu0 %v3331_v49 }
 0x3fa   : > { %3396 = vadd.xlane.f32.xlu0 %v3333_v14 }
 0x447   : > { %v6029_v55 = vpop.xlane.xlu1 %3336  ;;  %v6031_v8 = vpop.xlane.xlu0 %3334 }
 0x44b   : > { %v6033_v23 = vpop.xlane.xlu1 %3342  ;;  %v6035_v17 = vpop.xlane.xlu0 %3338 }
 0x44f   : > { %v6037_v44 = vpop.xlane.xlu1 %3346  ;;  %v6039_v61 = vpop.xlane.xlu0 %3340 }
 0x453   : > { %v6041_v27 = vpop.xlane.xlu1 %3350  ;;  %v3345_v7 = vpop.xlane.xlu0 %3344 }
 0x457   : > { %v6043_v62 = vpop.xlane.xlu1 %3354  ;;  %v6045_v2 = vpop.xlane.xlu0 %3348 }
 0x45b   : > { %v6047_v41 = vpop.xlane.xlu1 %3358  ;;  %v3353_v1 = vpop.xlane.xlu0 %3352 }
 0x45f   : > { %v6049_v5 = vpop.xlane.xlu1 %3362  ;;  %v6051_v18 = vpop.xlane.xlu0 %3356 }
 0x463   : > { %v6053_v25 = vpop.xlane.xlu1 %3366  ;;  %v3361_v32 = vpop.xlane.xlu0 %3360 }
 0x467   : > { %v6055_v43 = vpop.xlane.xlu1 %3370  ;;  %v6057_v46 = vpop.xlane.xlu0 %3364 }
 0x46b   : > { %v6059_v38 = vpop.xlane.xlu1 %3374  ;;  %v6061_v48 = vpop.xlane.xlu0 %3368 }
 0x46f   : > { %v6063_v12 = vpop.xlane.xlu1 %3378  ;;  %v6065_v0 = vpop.xlane.xlu0 %3372 }
 0x473   : > { %v6067_v16 = vpop.xlane.xlu1 %3382  ;;  %v6069_v31 = vpop.xlane.xlu0 %3376 }
 0x477   : > { %v6071_v20 = vpop.xlane.xlu1 %3386  ;;  %v6073_v6 = vpop.xlane.xlu0 %3380 }
 0x47b   : > { %v6075_v21 = vpop.xlane.xlu1 %3390  ;;  %v6077_v26 = vpop.xlane.xlu0 %3384 }
 0x47f   : > { %v6079_v58 = vpop.xlane.xlu1 %3394  ;;  %v6081_v42 = vpop.xlane.xlu0 %3388 }
 0x481   : > { %3401 = sbr.rel (%p3774_p11) target bundleno = 1160 (0x488), region = 114 }
 0x483   : > { %v6083_v50 = vpop.xlane.xlu0 %3392 }
 0x487   : > { %v6085_v52 = vpop.xlane.xlu0 %3396 }
 0x488 PF: > { %v3437_v35 = vand.u32 127, %v3270_v54  ;;  %vm3447_vm2 = vcmask 130112   ;;  %vm3454_vm3 = vcmask 195712   ;;  %vm3461_vm4 = vcmask 261312   ;;  %s4733_s25 = smov [#allocation11]   ;;  %s6302_s22 = sadd.s32 4294967295, %s4725_s8  }
 0x489   : > { %vm3596_vm5 = vcmask 1041409   ;;  %vm3598_vm6 = vcmask 1042434   ;;  %vm3600_vm7 = vcmask 1043459   ;;  %vm3602_vm8 = vcmask 1044484   ;;  %s3622_s19 = sshll.u32 %s4733_s25, 4  ;;  %p6183_p13 = scmp.eq.s32.totalorder %s6302_s22, 1  ;;  %s3623_s19 = int_to_ptr.vmem [resolvable:$true] %s3622_s19 }
 0x48a   : > { %v6091_v59 = vsub.s32 %v3437_v35, %v5958_v51  ;;  %v3442_v9 = vadd.s32 4294967288, %v3437_v35  ;;  %v3449_v30 = vadd.s32 4294967280, %v3437_v35  ;;  %v3456_v39 = vadd.s32 4294967272, %v3437_v35  ;;  %s4649_s29 = scalar_lea.vmem %s3623_s19, 128  ;;  %p4656_p4 = scmp.lt.s32.totalorder %s3623_s19, %s3623_s19 }
 0x48b   : > { %vm3604_vm9 = vcmask 1045509   ;;  %vm3606_vm10 = vcmask 1046534   ;;  %vm3608_vm11 = vcmask 1047559   ;;  %p4650_p0 = scmp.ne.s32.totalorder %s3623_s19, %s4649_s29  ;;  %p4657_p5 = scmp.lt.s32.totalorder %s4649_s29, %s4649_s29 }
 0x48c   : > { %v3441_v15 = vrot.slane %v6031_v8, %v6091_v59  ;;  %v3445_v19 = vsub.s32 %v3442_v9, %v5958_v51  ;;  %v6097_v37 = vsub.s32 %v3449_v30, %v5958_v51  ;;  %v6100_v13 = vsub.s32 %v3456_v39, %v5958_v51  ;;  %v3403_v39 = vld [vmem:[#allocation11] sm:$0xff] }
 0x48d   : > { %v3466_v54 = vrot.slane %v6033_v23, %v6091_v59  ;;  %v3485_v34 = vrot.slane %v6041_v27, %v6091_v59  ;;  %v3504_v28 = vrot.slane %v6047_v41, %v6091_v59  ;;  %v3523_v56 = vrot.slane %v6053_v25, %v6091_v59  ;;  %p4651_p1 = pnand %p4650_p0, %p6183_p13  ;;  %p4658_p6 = por %p4657_p5, %p4656_p4 }
 0x48e   : > { %v3446_v53 = vrot.slane %v6029_v55, %v3445_v19  ;;  %v3453_v11 = vrot.slane %v6035_v17, %v6097_v37  ;;  %v3460_v51 = vrot.slane %v6039_v61, %v6100_v13  ;;  %v3470_v29 = vrot.slane %v3345_v7, %v3445_v19 }
 0x48f   : > { %v3475_v22 = vrot.slane %v6037_v44, %v6097_v37  ;;  %v3480_v45 = vrot.slane %v6045_v2, %v6100_v13  ;;  %v3489_v57 = vrot.slane %v3353_v1, %v3445_v19  ;;  %v3494_v40 = vrot.slane %v6043_v62, %v6097_v37  ;;  %p4652_p2 = pneg %p4651_p1 }
 0x490   : > { %v3448_v4 = vsel %vm3447_vm2, %v3446_v53, %v3441_v15  ;;  %v3471_v36 = vsel %vm3447_vm2, %v3470_v29, %v3466_v54  ;;  %v3499_v47 = vrot.slane %v6051_v18, %v6100_v13  ;;  %v3508_v63 = vrot.slane %v3361_v32, %v3445_v19 }
 0x491   : > { %v3455_v33 = vsel %vm3454_vm3, %v3453_v11, %v3448_v4  ;;  %v3476_v3 = vsel %vm3454_vm3, %v3475_v22, %v3471_v36  ;;  %v3490_v60 = vsel %vm3447_vm2, %v3489_v57, %v3485_v34  ;;  %v3513_v49 = vrot.slane %v6049_v5, %v6097_v37  ;;  %p4659_p9 = pnand %p4658_p6, %p4652_p2 }
 0x492   : > { %v3462_v10 = vsel %vm3461_vm4, %v3460_v51, %v3455_v33  ;;  %v3495_v14 = vsel %vm3454_vm3, %v3494_v40, %v3490_v60  ;;  %v3509_v55 = vsel %vm3447_vm2, %v3508_v63, %v3504_v28  ;;  %v3481_v8 = vsel %vm3461_vm4, %v3480_v45, %v3476_v3 }
 0x493   : > { %v3514_v23 = vsel %vm3454_vm3, %v3513_v49, %v3509_v55  ;;  %v3518_v17 = vrot.slane %v6057_v46, %v6100_v13  ;;  %v3527_v44 = vrot.slane %v6061_v48, %v3445_v19  ;;  %v3532_v61 = vrot.slane %v6055_v43, %v6097_v37 }
 0x494   : > { %v3537_v27 = vrot.slane %v6065_v0, %v6100_v13  ;;  %v3542_v7 = vrot.slane %v6059_v38, %v6091_v59  ;;  %v3546_v62 = vrot.slane %v6069_v31, %v3445_v19  ;;  %v3500_v2 = vsel %vm3461_vm4, %v3499_v47, %v3495_v14 }
 0x495   : > { %v3528_v41 = vsel %vm3447_vm2, %v3527_v44, %v3523_v56  ;;  %v3551_v1 = vrot.slane %v6063_v12, %v6097_v37  ;;  %v3556_v5 = vrot.slane %v6073_v6, %v6100_v13  ;;  %v3561_v32 = vrot.slane %v6067_v16, %v6091_v59 }
 0x496   : > { %v3533_v18 = vsel %vm3454_vm3, %v3532_v61, %v3528_v41  ;;  %v3547_v25 = vsel %vm3447_vm2, %v3546_v62, %v3542_v7  ;;  %v3565_v43 = vrot.slane %v6077_v26, %v3445_v19  ;;  %v3519_v46 = vsel %vm3461_vm4, %v3518_v17, %v3514_v23 }
 0x497   : > { %v3552_v38 = vsel %vm3454_vm3, %v3551_v1, %v3547_v25  ;;  %v3570_v48 = vrot.slane %v6071_v20, %v6097_v37  ;;  %v3575_v12 = vrot.slane %v6081_v42, %v6100_v13  ;;  %v3538_v0 = vsel %vm3461_vm4, %v3537_v27, %v3533_v18 }
 0x498   : > { %v3566_v31 = vsel %vm3447_vm2, %v3565_v43, %v3561_v32  ;;  %v3580_v6 = vrot.slane %v6075_v21, %v6091_v59  ;;  %v3584_v16 = vrot.slane %v6083_v50, %v3445_v19  ;;  %v3589_v24 = vrot.slane %v6079_v58, %v6097_v37 }
 0x499   : > { %v3571_v26 = vsel %vm3454_vm3, %v3570_v48, %v3566_v31  ;;  %v3594_v20 = vrot.slane %v6085_v52, %v6100_v13  ;;  %v3597_v35 = vsel %vm3596_vm5, %v3481_v8, %v3462_v10  ;;  %v3557_v42 = vsel %vm3461_vm4, %v3556_v5, %v3552_v38 }
 0x49a   : > { %v3585_v9 = vsel %vm3447_vm2, %v3584_v16, %v3580_v6  ;;  %v3599_v30 = vsel %vm3598_vm6, %v3500_v2, %v3597_v35  ;;  %v3576_v21 = vsel %vm3461_vm4, %v3575_v12, %v3571_v26 }
 0x49b   : > { %v3590_v50 = vsel %vm3454_vm3, %v3589_v24, %v3585_v9  ;;  %v3601_v59 = vsel %vm3600_vm7, %v3519_v46, %v3599_v30 }
 0x49c   : > { %v3595_v58 = vsel %vm3461_vm4, %v3594_v20, %v3590_v50  ;;  %v3603_v52 = vsel %vm3602_vm8, %v3538_v0, %v3601_v59 }
 0x49d   : > { %v3605_v15 = vsel %vm3604_vm9, %v3557_v42, %v3603_v52 }
 0x49e   : > { %v3607_v19 = vsel %vm3606_vm10, %v3576_v21, %v3605_v15 }
 0x49f   : > { %v3609_v37 = vsel %vm3608_vm11, %v3595_v58, %v3607_v19 }
 0x4a0   : > { %v3611_v13 = vadd.f32 %v3609_v37, %v3403_v39 }
 0x4a2   : > { %3612 = vst.msk [vmem:[#allocation11] sm:$0xff] %vm2302_vm1, %v3611_v13 }
 0x4a3   : > { %4662 = shalt.err (!%p4659_p9)
}
 0x4a4   : > { %s4663_s16 = scalar_lea.hbm %s6236_s11, 128 }
 0x4a5   : > { %p4664_p8 = scmp.ne.s32.totalorder %s6236_s11, %s4663_s16  ;;  %p4669_p12 = scmp.lt.u32.totalorder %s4663_s16, %s6236_s11 }
 0x4a7   : > { %p4665_p3 = pnand %p4664_p8, %p6183_p13 }
 0x4a9   : > { %p4666_p10 = pneg %p4665_p3 }
 0x4ab   : > { %p4671_p7 = pnand %p4669_p12, %p4666_p10 }
 0x4ad   : > { %4674 = shalt.err (!%p4671_p7)
}
 0x4ae   : > { %4388 = dma.vmem_to_hbm [thread:$0]  (%p6183_p13), %s3623_s19, 128, %s6236_s11, [#allocation8]  }
 0x4af   : > { %4704 = dma.done.wait (%p6183_p13), [#allocation8], 128  }
 0x4b0   : > { %4706 = vsyncadd (%p6183_p13), [#allocation8], 4294967168 }
 0x4b1 PF: > { %s27_s8 = sadd.s32 1, %s4725_s8   ;;  %s6304_s9 = sld [smem:[#allocation16_spill]] }
 0x4b2   : > { %p24_p11 = scmp.ge.s32.totalorder %s27_s8, 4   ;;  %s6305_s10 = sld [smem:[#allocation15_spill]] }
 0x4b3   : > { %s6306_s23 = smov %s4713_s24  ;;  %s6308_s25 = smov %s4721_s26 }
 0x4b4   :  { %26 = sbr.rel (!%p24_p11) target bundleno = 9 (0x9), region = 151 }
 0x4b7   : > { %s6307_s24 = smov %s6304_s9 }
 0x4b8   : > { %s6309_s26 = smov %s6305_s10 }
 0x4bb   :  { %3635 = vsyncpa [#allocation7], 1 }
 0x4bc   :  { %3637 = vsyncpa [#allocation7 + $0x1], 1 }
 0x4bd   :  { %3638 = vsyncpa [#allocation10], 1 }
 0x4be   :  { %3639 = vsyncpa [#allocation8], 1 }
 0x4bf   :  { %3641 = vsyncpa [#allocation8 + $0x1], 1 }

</bundles_post_ra>
